<compile_context>
chip_gen: v6e
topology: v6e:2x2x1
jax: 0.10.0
libtpu: 0.0.40
codegen_flags: <defaults>
</compile_context>

<pallas_src>
import functools

import jax
import jax.numpy as jnp
from jax.experimental import pallas as pl
from jax.experimental.pallas import tpu as pltpu


def _round_up(x, m):
    return ((x + m - 1) // m) * m


def _pad_gate_rows(w, H, H_pad):
    """w: (4H, K) with gates [i,f,g,o] stacked along rows -> (4*H_pad, K), per-gate zero pad."""
    parts = [jnp.pad(w[g * H:(g + 1) * H], ((0, H_pad - H), (0, 0))) for g in range(4)]
    return jnp.concatenate(parts, axis=0)


def _pad_gate_vec(b, H, H_pad):
    parts = [jnp.pad(b[g * H:(g + 1) * H], (0, H_pad - H)) for g in range(4)]
    return jnp.concatenate(parts, axis=0)


def _default_t_chunk(T, B_pad, E, H_pad, vmem_budget=24 << 20):
    """Largest chunk that fits the activation VMEM budget, preferring a divisor of T
    (so no per-step tail masking is compiled in)."""
    def chunk_bytes(t):
        # 2x double-buffered bf16 emb chunk + f32 xg scratch
        return 2 * (t * B_pad * E * 2) + t * B_pad * 4 * H_pad * 4

    t_max = T
    while t_max > 1 and chunk_bytes(t_max) > vmem_budget:
        t_max -= 1
    for t in range(t_max, 0, -1):
        if T % t == 0:
            return t
    return max(t_max, 1)


def _lstm_classifier_kernel(T_total, T_CHUNK, B_pad, H_pad, mask_needed, unroll,
                            emb_ref,   # (T_CHUNK*B_pad, E) bf16  time-major rows: t*B_pad + b
                            wih_ref,   # (E, 4*H_pad)       bf16
                            whh_ref,   # (H_pad, 4*H_pad)   bf16
                            b_ref,     # (1, 4*H_pad)       f32   b_ih + b_hh (gate-padded)
                            wfc_ref,   # (1, H_pad)         f32
                            bfc_ref,   # (1, 1)             f32
                            out_ref,   # (B_pad, 128)       f32   lane-dense output
                            h_scr,     # VMEM (B_pad, H_pad) bf16  carried across chunks
                            c_scr,     # VMEM (B_pad, H_pad) f32   carried across chunks
                            xg_scr):   # VMEM (T_CHUNK*B_pad, 4*H_pad) f32
    tc = pl.program_id(0)

    @pl.when(tc == 0)
    def _():
        h_scr[...] = jnp.zeros_like(h_scr)
        c_scr[...] = jnp.zeros_like(c_scr)

    # Input projection for the whole chunk as ONE MXU GEMM (bias folded in), parked in VMEM
    # scratch so it does not occupy vregs across the recurrence.
    xg_scr[...] = jnp.dot(emb_ref[...], wih_ref[...],
                          preferred_element_type=jnp.float32) + b_ref[...]

    base_t = tc * T_CHUNK

    def step(t, carry):
        h_bf, c = carry
        if isinstance(t, int):                       # static-unroll path
            g_x = xg_scr[t * B_pad:(t + 1) * B_pad, :]
        else:                                        # fori_loop path
            row0 = pl.multiple_of(t * B_pad, 8)
            g_x = xg_scr[pl.ds(row0, B_pad), :]
        # W_hh streamed from VMEM into the MXU each step (not hoisted into vregs).
        gates = jnp.dot(h_bf, whh_ref[...],
                        preferred_element_type=jnp.float32) + g_x
        i_g = jax.nn.sigmoid(gates[:, 0:H_pad])
        f_g = jax.nn.sigmoid(gates[:, H_pad:2 * H_pad])
        g_g = jnp.tanh(gates[:, 2 * H_pad:3 * H_pad])
        o_g = jax.nn.sigmoid(gates[:, 3 * H_pad:4 * H_pad])
        c_new = f_g * c + i_g * g_g
        h_new = (o_g * jnp.tanh(c_new)).astype(jnp.bfloat16)
        if mask_needed:                              # compiled in only if t_chunk doesn't divide T
            valid = (base_t + t) < T_total
            h_new = jnp.where(valid, h_new, h_bf)
            c_new = jnp.where(valid, c_new, c)
        return h_new, c_new

    carry = (h_scr[...], c_scr[...])
    if T_CHUNK <= 16:
        for t in range(T_CHUNK):                     # short chunk: full static unroll
            carry = step(t, carry)
    else:                                            # long chunk: bounded live ranges
        carry = jax.lax.fori_loop(0, T_CHUNK, step, carry, unroll=unroll)
    h_bf, c = carry

    h_scr[...] = h_bf
    c_scr[...] = c

    @pl.when(tc == pl.num_programs(0) - 1)
    def _():
        # FC as a VPU multiply + cross-lane reduce (avoids a 1-column MXU op),
        # written lane-dense; the wrapper slices [:B, :1].
        logit = jnp.sum(h_bf.astype(jnp.float32) * wfc_ref[...],
                        axis=-1, keepdims=True) + bfc_ref[...]        # (B_pad, 1)
        out_ref[...] = jnp.broadcast_to(jax.nn.sigmoid(logit), out_ref.shape)


@functools.partial(jax.jit, static_argnames=("t_chunk",))
def sentiment_classifier_forward(text, params, *, t_chunk=None):
    """text: int32 (B, T) token ids. Returns float32 (B, 1) probabilities."""
    emb_table = params["embedding"]                     # (V, E) f32, row 0 zeros (padding_idx=0)
    E = emb_table.shape[1]
    H = params["w_hh"].shape[1]
    B, T = text.shape

    H_pad = _round_up(H, 128)                           # lane alignment for gate slices
    B_pad = _round_up(B, 8)                             # sublane alignment

    if t_chunk is None:
        t_chunk = _default_t_chunk(T, B_pad, E, H_pad)  # divisor of T -> no tail mask
    n_chunks = pl.cdiv(T, t_chunk)
    T_pad = n_chunks * t_chunk
    mask_needed = (T_pad != T)

    # Gather first (only the needed rows leave HBM), then cast the gathered activations to bf16:
    # no full V x E cast pass, no (B,T,E)->(T,B,E) transpose pass.
    emb_tbe = jnp.take(emb_table, text.T, axis=0).astype(jnp.bfloat16)       # (T, B, E)
    emb_tbe = jnp.pad(emb_tbe, ((0, T_pad - T), (0, B_pad - B), (0, 0)))     # (T_pad, B_pad, E)
    emb2d = emb_tbe.reshape(T_pad * B_pad, E)                                # rows = t*B_pad + b

    # Weights: per-gate zero-padded so each gate occupies a lane-aligned 128-multiple block.
    wih_t = _pad_gate_rows(params["w_ih"], H, H_pad).T.astype(jnp.bfloat16)           # (E, 4H_pad)
    whh_in_pad = jnp.pad(params["w_hh"], ((0, 0), (0, H_pad - H)))                    # (4H, H_pad)
    whh_t = _pad_gate_rows(whh_in_pad, H, H_pad).T.astype(jnp.bfloat16)               # (H_pad, 4H_pad)
    bias = _pad_gate_vec(params["b_ih"] + params["b_hh"], H, H_pad)[None, :]          # (1, 4H_pad) f32
    wfc_row = jnp.pad(params["w_fc"], ((0, 0), (0, H_pad - H)))                       # (1, H_pad)  f32
    bfc = params["b_fc"][None, :]                                                     # (1, 1)      f32

    # VMEM budget (bytes): double-buffered emb chunk + (2x) resident weights + xg scratch
    # + h/c state + double-buffered output.  Limit capped well under v7x's 64 MiB physical VMEM.
    emb_chunk_bytes = t_chunk * B_pad * E * 2
    xg_bytes = t_chunk * B_pad * 4 * H_pad * 4
    weight_bytes = (E * 4 * H_pad * 2 + H_pad * 4 * H_pad * 2
                    + 4 * H_pad * 4 + H_pad * 4 + 4)
    state_bytes = B_pad * H_pad * (2 + 4)
    out_bytes = B_pad * 128 * 4
    vmem_needed = 2 * emb_chunk_bytes + 2 * weight_bytes + xg_bytes + state_bytes + 2 * out_bytes
    vmem_limit = int(min(40 << 20, max(8 << 20, 2 * vmem_needed)))

    kernel = functools.partial(_lstm_classifier_kernel,
                               T, t_chunk, B_pad, H_pad, mask_needed, 4)

    out = pl.pallas_call(
        kernel,
        out_shape=jax.ShapeDtypeStruct((B_pad, 128), jnp.float32),
        grid_spec=pltpu.PrefetchScalarGridSpec(
            num_scalar_prefetch=0,
            grid=(n_chunks,),
            in_specs=[
                pl.BlockSpec((t_chunk * B_pad, E), lambda t: (t, 0)),     # pipelined over T-chunks
                pl.BlockSpec((E, 4 * H_pad), lambda t: (0, 0)),           # resident weights
                pl.BlockSpec((H_pad, 4 * H_pad), lambda t: (0, 0)),
                pl.BlockSpec((1, 4 * H_pad), lambda t: (0, 0)),
                pl.BlockSpec((1, H_pad), lambda t: (0, 0)),
                pl.BlockSpec((1, 1), lambda t: (0, 0)),
            ],
            out_specs=pl.BlockSpec((B_pad, 128), lambda t: (0, 0)),       # lane-dense output
            scratch_shapes=[
                pltpu.VMEM((B_pad, H_pad), jnp.bfloat16),                 # h (bf16 carry)
                pltpu.VMEM((B_pad, H_pad), jnp.float32),                  # c (f32 carry)
                pltpu.VMEM((t_chunk * B_pad, 4 * H_pad), jnp.float32),    # per-chunk x-projection
            ],
        ),
        compiler_params=pltpu.CompilerParams(
            dimension_semantics=("arbitrary",),            # time recurrence is serial
            vmem_limit_bytes=vmem_limit,
        ),
    )(emb2d, wih_t, whh_t, bias, wfc_row, bfc)

    return out[:B, :1]


def _reference_forward(text, params):
    """Pure-JAX f32 reference mirroring the PyTorch module (correctness check)."""
    emb = jnp.take(params["embedding"], text, axis=0)     # (B, T, E)
    B = text.shape[0]
    H = params["w_hh"].shape[1]

    def step(carry, x_t):
        h, c = carry
        gates = (x_t @ params["w_ih"].T + params["b_ih"]
                 + h @ params["w_hh"].T + params["b_hh"])
        i, f, g, o = jnp.split(gates, 4, axis=-1)
        i = jax.nn.sigmoid(i)
        f = jax.nn.sigmoid(f)
        g = jnp.tanh(g)
        o = jax.nn.sigmoid(o)
        c = f * c + i * g
        h = o * jnp.tanh(c)
        return (h, c), None

    init = (jnp.zeros((B, H), jnp.float32), jnp.zeros((B, H), jnp.float32))
    (h, _), _ = jax.lax.scan(step, init, jnp.transpose(emb, (1, 0, 2)))
    return jax.nn.sigmoid(h @ params["w_fc"].T + params["b_fc"])


def _init_params(key, vocab_size, embedding_dim, hidden_dim, output_dim):
    ks = jax.random.split(key, 7)
    scale = 0.1
    emb = scale * jax.random.normal(ks[0], (vocab_size, embedding_dim), jnp.float32)
    emb = emb.at[0].set(0.0)  # padding_idx=0 -> zero row, like nn.Embedding(padding_idx=0)
    return {
        "embedding": emb,
        "w_ih": scale * jax.random.normal(ks[1], (4 * hidden_dim, embedding_dim), jnp.float32),
        "w_hh": scale * jax.random.normal(ks[2], (4 * hidden_dim, hidden_dim), jnp.float32),
        "b_ih": scale * jax.random.normal(ks[3], (4 * hidden_dim,), jnp.float32),
        "b_hh": scale * jax.random.normal(ks[4], (4 * hidden_dim,), jnp.float32),
        "w_fc": scale * jax.random.normal(ks[5], (output_dim, hidden_dim), jnp.float32),
        "b_fc": scale * jax.random.normal(ks[6], (output_dim,), jnp.float32),
    }


if __name__ == "__main__":
    VOCAB, E, H, OUT = 64, 32, 32, 1
    B, T = 2, 8

    key = jax.random.PRNGKey(0)
    k_param, k_text, k_text2 = jax.random.split(key, 3)
    params = _init_params(k_param, VOCAB, E, H, OUT)
    text = jax.random.randint(k_text, (B, T), minval=0, maxval=VOCAB, dtype=jnp.int32)

    ref = jax.block_until_ready(_reference_forward(text, params))

    # Default adaptive chunking: T=8 -> one chunk, grid=(1,), static-unrolled recurrence, no mask.
    out = jax.block_until_ready(sentiment_classifier_forward(text, params))
    assert out.shape == (B, OUT)
    assert jnp.allclose(out, ref, atol=2e-2, rtol=2e-2), (out, ref)   # bf16 matmul tolerance

    # Uneven chunking (3 chunks of 3, one tail-masked timestep): multi-chunk carry + mask path.
    out2 = jax.block_until_ready(sentiment_classifier_forward(text, params, t_chunk=3))
    assert jnp.allclose(out2, ref, atol=2e-2, rtol=2e-2), (out2, ref)

    # Longer sequence: exercises the fori_loop (unroll=4) recurrence path with a single big chunk.
    T2 = 40
    text2 = jax.random.randint(k_text2, (B, T2), minval=0, maxval=VOCAB, dtype=jnp.int32)
    ref2 = jax.block_until_ready(_reference_forward(text2, params))
    out3 = jax.block_until_ready(sentiment_classifier_forward(text2, params))
    assert jnp.allclose(out3, ref2, atol=2e-2, rtol=2e-2), (out3, ref2)

    # Longer sequence + non-dividing chunk: fori_loop path with mask and multi-chunk carry.
    out4 = jax.block_until_ready(sentiment_classifier_forward(text2, params, t_chunk=24))
    assert jnp.allclose(out4, ref2, atol=2e-2, rtol=2e-2), (out4, ref2)

    print("KERNEL_OK")
</pallas_src>

<mosaic_0001>
module attributes {stable_mosaic.version = 11 : i64} {
  func.func @_lstm_classifier_kernel(%arg0: i32, %arg1: memref<64x32xbf16, #tpu.memory_space<vmem>>, %arg2: memref<32x512xbf16, #tpu.memory_space<vmem>>, %arg3: memref<128x512xbf16, #tpu.memory_space<vmem>>, %arg4: memref<1x512xf32, #tpu.memory_space<vmem>>, %arg5: memref<1x128xf32, #tpu.memory_space<vmem>>, %arg6: memref<1x1xf32, #tpu.memory_space<vmem>>, %arg7: memref<8x128xf32, #tpu.memory_space<vmem>>, %arg8: memref<8x128xbf16, #tpu.memory_space<vmem>>, %arg9: memref<8x128xf32, #tpu.memory_space<vmem>>, %arg10: memref<64x512xf32, #tpu.memory_space<vmem>>) attributes {dimension_semantics = [#tpu.dimension_semantics<arbitrary>], iteration_bounds = array<i64: 1>, scalar_prefetch = 0 : i64, scratch_operands = 3 : i64, tpu.core_type = #tpu.core_type<tc>, window_params = [{transform_indices = @transform_0, window_bounds = array<i64: 64, 32>}, {pipeline_mode = #tpu.pipeline_mode<synchronous>, transform_indices = @transform_1, window_bounds = array<i64: 32, 512>}, {pipeline_mode = #tpu.pipeline_mode<synchronous>, transform_indices = @transform_2, window_bounds = array<i64: 128, 512>}, {pipeline_mode = #tpu.pipeline_mode<synchronous>, transform_indices = @transform_3, window_bounds = array<i64: 1, 512>}, {pipeline_mode = #tpu.pipeline_mode<synchronous>, transform_indices = @transform_4, window_bounds = array<i64: 1, 128>}, {pipeline_mode = #tpu.pipeline_mode<synchronous>, transform_indices = @transform_5, window_bounds = array<i64: 1, 1>}, {pipeline_mode = #tpu.pipeline_mode<synchronous>, transform_indices = @transform_6, window_bounds = array<i64: 8, 128>}]} {
    %c0_i32 = arith.constant 0 : i32
    %0 = arith.cmpi eq, %arg0, %c0_i32 : i32
    %1 = arith.extui %0 : i1 to i32
    %c0_i32_0 = arith.constant 0 : i32
    %2 = arith.cmpi ne, %1, %c0_i32_0 : i32
    scf.if %2 {
      %cst_75 = arith.constant 0.000000e+00 : bf16
      %257 = vector.broadcast %cst_75 : bf16 to vector<8x128xbf16>
      %c0_76 = arith.constant 0 : index
      %c0_77 = arith.constant 0 : index
      %258 = vector.load %arg8[%c0_76, %c0_77] : memref<8x128xbf16, #tpu.memory_space<vmem>>, vector<8x128xbf16>
      tpu.vector_store %arg8[%c0_76, %c0_77], %257 {strides = array<i32>} : memref<8x128xbf16, #tpu.memory_space<vmem>>, vector<8x128xbf16>,
      %cst_78 = arith.constant 0.000000e+00 : f32
      %259 = vector.broadcast %cst_78 : f32 to vector<8x128xf32>
      %c0_79 = arith.constant 0 : index
      %c0_80 = arith.constant 0 : index
      %260 = vector.load %arg9[%c0_79, %c0_80] : memref<8x128xf32, #tpu.memory_space<vmem>>, vector<8x128xf32>
      tpu.vector_store %arg9[%c0_79, %c0_80], %259 {strides = array<i32>} : memref<8x128xf32, #tpu.memory_space<vmem>>, vector<8x128xf32>,
    } else {
    }
    %c0 = arith.constant 0 : index
    %c0_1 = arith.constant 0 : index
    %3 = vector.load %arg1[%c0, %c0_1] : memref<64x32xbf16, #tpu.memory_space<vmem>>, vector<64x32xbf16>
    %c0_2 = arith.constant 0 : index
    %c0_3 = arith.constant 0 : index
    %4 = vector.load %arg2[%c0_2, %c0_3] : memref<32x512xbf16, #tpu.memory_space<vmem>>, vector<32x512xbf16>
    %cst = arith.constant dense<0.000000e+00> : vector<64x512xf32>
    %5 = tpu.matmul %3, %4, %cst {dimension_numbers = #tpu.dot_dimension_numbers<[1], [0], [0], [1], [0, 0, 1, 1], [], []>} : vector<64x32xbf16>, vector<32x512xbf16>, vector<64x512xf32> -> vector<64x512xf32>
    %c0_4 = arith.constant 0 : index
    %c0_5 = arith.constant 0 : index
    %6 = vector.load %arg4[%c0_4, %c0_5] : memref<1x512xf32, #tpu.memory_space<vmem>>, vector<1x512xf32>
    %7 = vector.broadcast %6 : vector<1x512xf32> to vector<64x512xf32>
    %8 = arith.addf %5, %7 : vector<64x512xf32>
    %c0_6 = arith.constant 0 : index
    %c0_7 = arith.constant 0 : index
    %9 = vector.load %arg10[%c0_6, %c0_7] : memref<64x512xf32, #tpu.memory_space<vmem>>, vector<64x512xf32>
    tpu.vector_store %arg10[%c0_6, %c0_7], %8 {strides = array<i32>} : memref<64x512xf32, #tpu.memory_space<vmem>>, vector<64x512xf32>,
    %c0_8 = arith.constant 0 : index
    %c0_9 = arith.constant 0 : index
    %10 = vector.load %arg8[%c0_8, %c0_9] : memref<8x128xbf16, #tpu.memory_space<vmem>>, vector<8x128xbf16>
    %c0_10 = arith.constant 0 : index
    %c0_11 = arith.constant 0 : index
    %11 = vector.load %arg9[%c0_10, %c0_11] : memref<8x128xf32, #tpu.memory_space<vmem>>, vector<8x128xf32>
    %c0_12 = arith.constant 0 : index
    %c0_13 = arith.constant 0 : index
    %12 = vector.load %arg10[%c0_12, %c0_13] : memref<64x512xf32, #tpu.memory_space<vmem>>, vector<8x512xf32>
    %c0_14 = arith.constant 0 : index
    %c0_15 = arith.constant 0 : index
    %13 = vector.load %arg3[%c0_14, %c0_15] : memref<128x512xbf16, #tpu.memory_space<vmem>>, vector<128x512xbf16>
    %cst_16 = arith.constant dense<0.000000e+00> : vector<8x512xf32>
    %14 = tpu.matmul %10, %13, %cst_16 {dimension_numbers = #tpu.dot_dimension_numbers<[1], [0], [0], [1], [0, 0, 1, 1], [], []>} : vector<8x128xbf16>, vector<128x512xbf16>, vector<8x512xf32> -> vector<8x512xf32>
    %15 = arith.addf %14, %12 : vector<8x512xf32>
    %16 = vector.extract_strided_slice %15 {offsets = [0, 0], sizes = [8, 128], strides = [1, 1]} : vector<8x512xf32> to vector<8x128xf32>
    %17 = arith.negf %16 : vector<8x128xf32>
    %18 = math.exp %17 : vector<8x128xf32>
    %cst_17 = arith.constant 1.000000e+00 : f32
    %19 = vector.broadcast %cst_17 : f32 to vector<8x128xf32>
    %20 = arith.addf %19, %18 : vector<8x128xf32>
    %21 = arith.divf %19, %20 : vector<8x128xf32>
    %22 = vector.extract_strided_slice %15 {offsets = [0, 128], sizes = [8, 128], strides = [1, 1]} : vector<8x512xf32> to vector<8x128xf32>
    %23 = arith.negf %22 : vector<8x128xf32>
    %24 = math.exp %23 : vector<8x128xf32>
    %cst_18 = arith.constant 1.000000e+00 : f32
    %25 = vector.broadcast %cst_18 : f32 to vector<8x128xf32>
    %26 = arith.addf %25, %24 : vector<8x128xf32>
    %27 = arith.divf %25, %26 : vector<8x128xf32>
    %28 = vector.extract_strided_slice %15 {offsets = [0, 256], sizes = [8, 128], strides = [1, 1]} : vector<8x512xf32> to vector<8x128xf32>
    %29 = math.tanh %28 : vector<8x128xf32>
    %30 = vector.extract_strided_slice %15 {offsets = [0, 384], sizes = [8, 128], strides = [1, 1]} : vector<8x512xf32> to vector<8x128xf32>
    %31 = arith.negf %30 : vector<8x128xf32>
    %32 = math.exp %31 : vector<8x128xf32>
    %cst_19 = arith.constant 1.000000e+00 : f32
    %33 = vector.broadcast %cst_19 : f32 to vector<8x128xf32>
    %34 = arith.addf %33, %32 : vector<8x128xf32>
    %35 = arith.divf %33, %34 : vector<8x128xf32>
    %36 = arith.mulf %27, %11 : vector<8x128xf32>
    %37 = arith.mulf %21, %29 : vector<8x128xf32>
    %38 = arith.addf %36, %37 : vector<8x128xf32>
    %39 = math.tanh %38 : vector<8x128xf32>
    %40 = arith.mulf %35, %39 : vector<8x128xf32>
    %41 = arith.truncf %40 : vector<8x128xf32> to vector<8x128xbf16>
    %c8 = arith.constant 8 : index
    %c0_20 = arith.constant 0 : index
    %42 = vector.load %arg10[%c8, %c0_20] : memref<64x512xf32, #tpu.memory_space<vmem>>, vector<8x512xf32>
    %c0_21 = arith.constant 0 : index
    %c0_22 = arith.constant 0 : index
    %43 = vector.load %arg3[%c0_21, %c0_22] : memref<128x512xbf16, #tpu.memory_space<vmem>>, vector<128x512xbf16>
    %cst_23 = arith.constant dense<0.000000e+00> : vector<8x512xf32>
    %44 = tpu.matmul %41, %43, %cst_23 {dimension_numbers = #tpu.dot_dimension_numbers<[1], [0], [0], [1], [0, 0, 1, 1], [], []>} : vector<8x128xbf16>, vector<128x512xbf16>, vector<8x512xf32> -> vector<8x512xf32>
    %45 = arith.addf %44, %42 : vector<8x512xf32>
    %46 = vector.extract_strided_slice %45 {offsets = [0, 0], sizes = [8, 128], strides = [1, 1]} : vector<8x512xf32> to vector<8x128xf32>
    %47 = arith.negf %46 : vector<8x128xf32>
    %48 = math.exp %47 : vector<8x128xf32>
    %cst_24 = arith.constant 1.000000e+00 : f32
    %49 = vector.broadcast %cst_24 : f32 to vector<8x128xf32>
    %50 = arith.addf %49, %48 : vector<8x128xf32>
    %51 = arith.divf %49, %50 : vector<8x128xf32>
    %52 = vector.extract_strided_slice %45 {offsets = [0, 128], sizes = [8, 128], strides = [1, 1]} : vector<8x512xf32> to vector<8x128xf32>
    %53 = arith.negf %52 : vector<8x128xf32>
    %54 = math.exp %53 : vector<8x128xf32>
    %cst_25 = arith.constant 1.000000e+00 : f32
    %55 = vector.broadcast %cst_25 : f32 to vector<8x128xf32>
    %56 = arith.addf %55, %54 : vector<8x128xf32>
    %57 = arith.divf %55, %56 : vector<8x128xf32>
    %58 = vector.extract_strided_slice %45 {offsets = [0, 256], sizes = [8, 128], strides = [1, 1]} : vector<8x512xf32> to vector<8x128xf32>
    %59 = math.tanh %58 : vector<8x128xf32>
    %60 = vector.extract_strided_slice %45 {offsets = [0, 384], sizes = [8, 128], strides = [1, 1]} : vector<8x512xf32> to vector<8x128xf32>
    %61 = arith.negf %60 : vector<8x128xf32>
    %62 = math.exp %61 : vector<8x128xf32>
    %cst_26 = arith.constant 1.000000e+00 : f32
    %63 = vector.broadcast %cst_26 : f32 to vector<8x128xf32>
    %64 = arith.addf %63, %62 : vector<8x128xf32>
    %65 = arith.divf %63, %64 : vector<8x128xf32>
    %66 = arith.mulf %57, %38 : vector<8x128xf32>
    %67 = arith.mulf %51, %59 : vector<8x128xf32>
    %68 = arith.addf %66, %67 : vector<8x128xf32>
    %69 = math.tanh %68 : vector<8x128xf32>
    %70 = arith.mulf %65, %69 : vector<8x128xf32>
    %71 = arith.truncf %70 : vector<8x128xf32> to vector<8x128xbf16>
    %c16 = arith.constant 16 : index
    %c0_27 = arith.constant 0 : index
    %72 = vector.load %arg10[%c16, %c0_27] : memref<64x512xf32, #tpu.memory_space<vmem>>, vector<8x512xf32>
    %c0_28 = arith.constant 0 : index
    %c0_29 = arith.constant 0 : index
    %73 = vector.load %arg3[%c0_28, %c0_29] : memref<128x512xbf16, #tpu.memory_space<vmem>>, vector<128x512xbf16>
    %cst_30 = arith.constant dense<0.000000e+00> : vector<8x512xf32>
    %74 = tpu.matmul %71, %73, %cst_30 {dimension_numbers = #tpu.dot_dimension_numbers<[1], [0], [0], [1], [0, 0, 1, 1], [], []>} : vector<8x128xbf16>, vector<128x512xbf16>, vector<8x512xf32> -> vector<8x512xf32>
    %75 = arith.addf %74, %72 : vector<8x512xf32>
    %76 = vector.extract_strided_slice %75 {offsets = [0, 0], sizes = [8, 128], strides = [1, 1]} : vector<8x512xf32> to vector<8x128xf32>
    %77 = arith.negf %76 : vector<8x128xf32>
    %78 = math.exp %77 : vector<8x128xf32>
    %cst_31 = arith.constant 1.000000e+00 : f32
    %79 = vector.broadcast %cst_31 : f32 to vector<8x128xf32>
    %80 = arith.addf %79, %78 : vector<8x128xf32>
    %81 = arith.divf %79, %80 : vector<8x128xf32>
    %82 = vector.extract_strided_slice %75 {offsets = [0, 128], sizes = [8, 128], strides = [1, 1]} : vector<8x512xf32> to vector<8x128xf32>
    %83 = arith.negf %82 : vector<8x128xf32>
    %84 = math.exp %83 : vector<8x128xf32>
    %cst_32 = arith.constant 1.000000e+00 : f32
    %85 = vector.broadcast %cst_32 : f32 to vector<8x128xf32>
    %86 = arith.addf %85, %84 : vector<8x128xf32>
    %87 = arith.divf %85, %86 : vector<8x128xf32>
    %88 = vector.extract_strided_slice %75 {offsets = [0, 256], sizes = [8, 128], strides = [1, 1]} : vector<8x512xf32> to vector<8x128xf32>
    %89 = math.tanh %88 : vector<8x128xf32>
    %90 = vector.extract_strided_slice %75 {offsets = [0, 384], sizes = [8, 128], strides = [1, 1]} : vector<8x512xf32> to vector<8x128xf32>
    %91 = arith.negf %90 : vector<8x128xf32>
    %92 = math.exp %91 : vector<8x128xf32>
    %cst_33 = arith.constant 1.000000e+00 : f32
    %93 = vector.broadcast %cst_33 : f32 to vector<8x128xf32>
    %94 = arith.addf %93, %92 : vector<8x128xf32>
    %95 = arith.divf %93, %94 : vector<8x128xf32>
    %96 = arith.mulf %87, %68 : vector<8x128xf32>
    %97 = arith.mulf %81, %89 : vector<8x128xf32>
    %98 = arith.addf %96, %97 : vector<8x128xf32>
    %99 = math.tanh %98 : vector<8x128xf32>
    %100 = arith.mulf %95, %99 : vector<8x128xf32>
    %101 = arith.truncf %100 : vector<8x128xf32> to vector<8x128xbf16>
    %c24 = arith.constant 24 : index
    %c0_34 = arith.constant 0 : index
    %102 = vector.load %arg10[%c24, %c0_34] : memref<64x512xf32, #tpu.memory_space<vmem>>, vector<8x512xf32>
    %c0_35 = arith.constant 0 : index
    %c0_36 = arith.constant 0 : index
    %103 = vector.load %arg3[%c0_35, %c0_36] : memref<128x512xbf16, #tpu.memory_space<vmem>>, vector<128x512xbf16>
    %cst_37 = arith.constant dense<0.000000e+00> : vector<8x512xf32>
    %104 = tpu.matmul %101, %103, %cst_37 {dimension_numbers = #tpu.dot_dimension_numbers<[1], [0], [0], [1], [0, 0, 1, 1], [], []>} : vector<8x128xbf16>, vector<128x512xbf16>, vector<8x512xf32> -> vector<8x512xf32>
    %105 = arith.addf %104, %102 : vector<8x512xf32>
    %106 = vector.extract_strided_slice %105 {offsets = [0, 0], sizes = [8, 128], strides = [1, 1]} : vector<8x512xf32> to vector<8x128xf32>
    %107 = arith.negf %106 : vector<8x128xf32>
    %108 = math.exp %107 : vector<8x128xf32>
    %cst_38 = arith.constant 1.000000e+00 : f32
    %109 = vector.broadcast %cst_38 : f32 to vector<8x128xf32>
    %110 = arith.addf %109, %108 : vector<8x128xf32>
    %111 = arith.divf %109, %110 : vector<8x128xf32>
    %112 = vector.extract_strided_slice %105 {offsets = [0, 128], sizes = [8, 128], strides = [1, 1]} : vector<8x512xf32> to vector<8x128xf32>
    %113 = arith.negf %112 : vector<8x128xf32>
    %114 = math.exp %113 : vector<8x128xf32>
    %cst_39 = arith.constant 1.000000e+00 : f32
    %115 = vector.broadcast %cst_39 : f32 to vector<8x128xf32>
    %116 = arith.addf %115, %114 : vector<8x128xf32>
    %117 = arith.divf %115, %116 : vector<8x128xf32>
    %118 = vector.extract_strided_slice %105 {offsets = [0, 256], sizes = [8, 128], strides = [1, 1]} : vector<8x512xf32> to vector<8x128xf32>
    %119 = math.tanh %118 : vector<8x128xf32>
    %120 = vector.extract_strided_slice %105 {offsets = [0, 384], sizes = [8, 128], strides = [1, 1]} : vector<8x512xf32> to vector<8x128xf32>
    %121 = arith.negf %120 : vector<8x128xf32>
    %122 = math.exp %121 : vector<8x128xf32>
    %cst_40 = arith.constant 1.000000e+00 : f32
    %123 = vector.broadcast %cst_40 : f32 to vector<8x128xf32>
    %124 = arith.addf %123, %122 : vector<8x128xf32>
    %125 = arith.divf %123, %124 : vector<8x128xf32>
    %126 = arith.mulf %117, %98 : vector<8x128xf32>
    %127 = arith.mulf %111, %119 : vector<8x128xf32>
    %128 = arith.addf %126, %127 : vector<8x128xf32>
    %129 = math.tanh %128 : vector<8x128xf32>
    %130 = arith.mulf %125, %129 : vector<8x128xf32>
    %131 = arith.truncf %130 : vector<8x128xf32> to vector<8x128xbf16>
    %c32 = arith.constant 32 : index
    %c0_41 = arith.constant 0 : index
    %132 = vector.load %arg10[%c32, %c0_41] : memref<64x512xf32, #tpu.memory_space<vmem>>, vector<8x512xf32>
    %c0_42 = arith.constant 0 : index
    %c0_43 = arith.constant 0 : index
    %133 = vector.load %arg3[%c0_42, %c0_43] : memref<128x512xbf16, #tpu.memory_space<vmem>>, vector<128x512xbf16>
    %cst_44 = arith.constant dense<0.000000e+00> : vector<8x512xf32>
    %134 = tpu.matmul %131, %133, %cst_44 {dimension_numbers = #tpu.dot_dimension_numbers<[1], [0], [0], [1], [0, 0, 1, 1], [], []>} : vector<8x128xbf16>, vector<128x512xbf16>, vector<8x512xf32> -> vector<8x512xf32>
    %135 = arith.addf %134, %132 : vector<8x512xf32>
    %136 = vector.extract_strided_slice %135 {offsets = [0, 0], sizes = [8, 128], strides = [1, 1]} : vector<8x512xf32> to vector<8x128xf32>
    %137 = arith.negf %136 : vector<8x128xf32>
    %138 = math.exp %137 : vector<8x128xf32>
    %cst_45 = arith.constant 1.000000e+00 : f32
    %139 = vector.broadcast %cst_45 : f32 to vector<8x128xf32>
    %140 = arith.addf %139, %138 : vector<8x128xf32>
    %141 = arith.divf %139, %140 : vector<8x128xf32>
    %142 = vector.extract_strided_slice %135 {offsets = [0, 128], sizes = [8, 128], strides = [1, 1]} : vector<8x512xf32> to vector<8x128xf32>
    %143 = arith.negf %142 : vector<8x128xf32>
    %144 = math.exp %143 : vector<8x128xf32>
    %cst_46 = arith.constant 1.000000e+00 : f32
    %145 = vector.broadcast %cst_46 : f32 to vector<8x128xf32>
    %146 = arith.addf %145, %144 : vector<8x128xf32>
    %147 = arith.divf %145, %146 : vector<8x128xf32>
    %148 = vector.extract_strided_slice %135 {offsets = [0, 256], sizes = [8, 128], strides = [1, 1]} : vector<8x512xf32> to vector<8x128xf32>
    %149 = math.tanh %148 : vector<8x128xf32>
    %150 = vector.extract_strided_slice %135 {offsets = [0, 384], sizes = [8, 128], strides = [1, 1]} : vector<8x512xf32> to vector<8x128xf32>
    %151 = arith.negf %150 : vector<8x128xf32>
    %152 = math.exp %151 : vector<8x128xf32>
    %cst_47 = arith.constant 1.000000e+00 : f32
    %153 = vector.broadcast %cst_47 : f32 to vector<8x128xf32>
    %154 = arith.addf %153, %152 : vector<8x128xf32>
    %155 = arith.divf %153, %154 : vector<8x128xf32>
    %156 = arith.mulf %147, %128 : vector<8x128xf32>
    %157 = arith.mulf %141, %149 : vector<8x128xf32>
    %158 = arith.addf %156, %157 : vector<8x128xf32>
    %159 = math.tanh %158 : vector<8x128xf32>
    %160 = arith.mulf %155, %159 : vector<8x128xf32>
    %161 = arith.truncf %160 : vector<8x128xf32> to vector<8x128xbf16>
    %c40 = arith.constant 40 : index
    %c0_48 = arith.constant 0 : index
    %162 = vector.load %arg10[%c40, %c0_48] : memref<64x512xf32, #tpu.memory_space<vmem>>, vector<8x512xf32>
    %c0_49 = arith.constant 0 : index
    %c0_50 = arith.constant 0 : index
    %163 = vector.load %arg3[%c0_49, %c0_50] : memref<128x512xbf16, #tpu.memory_space<vmem>>, vector<128x512xbf16>
    %cst_51 = arith.constant dense<0.000000e+00> : vector<8x512xf32>
    %164 = tpu.matmul %161, %163, %cst_51 {dimension_numbers = #tpu.dot_dimension_numbers<[1], [0], [0], [1], [0, 0, 1, 1], [], []>} : vector<8x128xbf16>, vector<128x512xbf16>, vector<8x512xf32> -> vector<8x512xf32>
    %165 = arith.addf %164, %162 : vector<8x512xf32>
    %166 = vector.extract_strided_slice %165 {offsets = [0, 0], sizes = [8, 128], strides = [1, 1]} : vector<8x512xf32> to vector<8x128xf32>
    %167 = arith.negf %166 : vector<8x128xf32>
    %168 = math.exp %167 : vector<8x128xf32>
    %cst_52 = arith.constant 1.000000e+00 : f32
    %169 = vector.broadcast %cst_52 : f32 to vector<8x128xf32>
    %170 = arith.addf %169, %168 : vector<8x128xf32>
    %171 = arith.divf %169, %170 : vector<8x128xf32>
    %172 = vector.extract_strided_slice %165 {offsets = [0, 128], sizes = [8, 128], strides = [1, 1]} : vector<8x512xf32> to vector<8x128xf32>
    %173 = arith.negf %172 : vector<8x128xf32>
    %174 = math.exp %173 : vector<8x128xf32>
    %cst_53 = arith.constant 1.000000e+00 : f32
    %175 = vector.broadcast %cst_53 : f32 to vector<8x128xf32>
    %176 = arith.addf %175, %174 : vector<8x128xf32>
    %177 = arith.divf %175, %176 : vector<8x128xf32>
    %178 = vector.extract_strided_slice %165 {offsets = [0, 256], sizes = [8, 128], strides = [1, 1]} : vector<8x512xf32> to vector<8x128xf32>
    %179 = math.tanh %178 : vector<8x128xf32>
    %180 = vector.extract_strided_slice %165 {offsets = [0, 384], sizes = [8, 128], strides = [1, 1]} : vector<8x512xf32> to vector<8x128xf32>
    %181 = arith.negf %180 : vector<8x128xf32>
    %182 = math.exp %181 : vector<8x128xf32>
    %cst_54 = arith.constant 1.000000e+00 : f32
    %183 = vector.broadcast %cst_54 : f32 to vector<8x128xf32>
    %184 = arith.addf %183, %182 : vector<8x128xf32>
    %185 = arith.divf %183, %184 : vector<8x128xf32>
    %186 = arith.mulf %177, %158 : vector<8x128xf32>
    %187 = arith.mulf %171, %179 : vector<8x128xf32>
    %188 = arith.addf %186, %187 : vector<8x128xf32>
    %189 = math.tanh %188 : vector<8x128xf32>
    %190 = arith.mulf %185, %189 : vector<8x128xf32>
    %191 = arith.truncf %190 : vector<8x128xf32> to vector<8x128xbf16>
    %c48 = arith.constant 48 : index
    %c0_55 = arith.constant 0 : index
    %192 = vector.load %arg10[%c48, %c0_55] : memref<64x512xf32, #tpu.memory_space<vmem>>, vector<8x512xf32>
    %c0_56 = arith.constant 0 : index
    %c0_57 = arith.constant 0 : index
    %193 = vector.load %arg3[%c0_56, %c0_57] : memref<128x512xbf16, #tpu.memory_space<vmem>>, vector<128x512xbf16>
    %cst_58 = arith.constant dense<0.000000e+00> : vector<8x512xf32>
    %194 = tpu.matmul %191, %193, %cst_58 {dimension_numbers = #tpu.dot_dimension_numbers<[1], [0], [0], [1], [0, 0, 1, 1], [], []>} : vector<8x128xbf16>, vector<128x512xbf16>, vector<8x512xf32> -> vector<8x512xf32>
    %195 = arith.addf %194, %192 : vector<8x512xf32>
    %196 = vector.extract_strided_slice %195 {offsets = [0, 0], sizes = [8, 128], strides = [1, 1]} : vector<8x512xf32> to vector<8x128xf32>
    %197 = arith.negf %196 : vector<8x128xf32>
    %198 = math.exp %197 : vector<8x128xf32>
    %cst_59 = arith.constant 1.000000e+00 : f32
    %199 = vector.broadcast %cst_59 : f32 to vector<8x128xf32>
    %200 = arith.addf %199, %198 : vector<8x128xf32>
    %201 = arith.divf %199, %200 : vector<8x128xf32>
    %202 = vector.extract_strided_slice %195 {offsets = [0, 128], sizes = [8, 128], strides = [1, 1]} : vector<8x512xf32> to vector<8x128xf32>
    %203 = arith.negf %202 : vector<8x128xf32>
    %204 = math.exp %203 : vector<8x128xf32>
    %cst_60 = arith.constant 1.000000e+00 : f32
    %205 = vector.broadcast %cst_60 : f32 to vector<8x128xf32>
    %206 = arith.addf %205, %204 : vector<8x128xf32>
    %207 = arith.divf %205, %206 : vector<8x128xf32>
    %208 = vector.extract_strided_slice %195 {offsets = [0, 256], sizes = [8, 128], strides = [1, 1]} : vector<8x512xf32> to vector<8x128xf32>
    %209 = math.tanh %208 : vector<8x128xf32>
    %210 = vector.extract_strided_slice %195 {offsets = [0, 384], sizes = [8, 128], strides = [1, 1]} : vector<8x512xf32> to vector<8x128xf32>
    %211 = arith.negf %210 : vector<8x128xf32>
    %212 = math.exp %211 : vector<8x128xf32>
    %cst_61 = arith.constant 1.000000e+00 : f32
    %213 = vector.broadcast %cst_61 : f32 to vector<8x128xf32>
    %214 = arith.addf %213, %212 : vector<8x128xf32>
    %215 = arith.divf %213, %214 : vector<8x128xf32>
    %216 = arith.mulf %207, %188 : vector<8x128xf32>
    %217 = arith.mulf %201, %209 : vector<8x128xf32>
    %218 = arith.addf %216, %217 : vector<8x128xf32>
    %219 = math.tanh %218 : vector<8x128xf32>
    %220 = arith.mulf %215, %219 : vector<8x128xf32>
    %221 = arith.truncf %220 : vector<8x128xf32> to vector<8x128xbf16>
    %c56 = arith.constant 56 : index
    %c0_62 = arith.constant 0 : index
    %222 = vector.load %arg10[%c56, %c0_62] : memref<64x512xf32, #tpu.memory_space<vmem>>, vector<8x512xf32>
    %c0_63 = arith.constant 0 : index
    %c0_64 = arith.constant 0 : index
    %223 = vector.load %arg3[%c0_63, %c0_64] : memref<128x512xbf16, #tpu.memory_space<vmem>>, vector<128x512xbf16>
    %cst_65 = arith.constant dense<0.000000e+00> : vector<8x512xf32>
    %224 = tpu.matmul %221, %223, %cst_65 {dimension_numbers = #tpu.dot_dimension_numbers<[1], [0], [0], [1], [0, 0, 1, 1], [], []>} : vector<8x128xbf16>, vector<128x512xbf16>, vector<8x512xf32> -> vector<8x512xf32>
    %225 = arith.addf %224, %222 : vector<8x512xf32>
    %226 = vector.extract_strided_slice %225 {offsets = [0, 0], sizes = [8, 128], strides = [1, 1]} : vector<8x512xf32> to vector<8x128xf32>
    %227 = arith.negf %226 : vector<8x128xf32>
    %228 = math.exp %227 : vector<8x128xf32>
    %cst_66 = arith.constant 1.000000e+00 : f32
    %229 = vector.broadcast %cst_66 : f32 to vector<8x128xf32>
    %230 = arith.addf %229, %228 : vector<8x128xf32>
    %231 = arith.divf %229, %230 : vector<8x128xf32>
    %232 = vector.extract_strided_slice %225 {offsets = [0, 128], sizes = [8, 128], strides = [1, 1]} : vector<8x512xf32> to vector<8x128xf32>
    %233 = arith.negf %232 : vector<8x128xf32>
    %234 = math.exp %233 : vector<8x128xf32>
    %cst_67 = arith.constant 1.000000e+00 : f32
    %235 = vector.broadcast %cst_67 : f32 to vector<8x128xf32>
    %236 = arith.addf %235, %234 : vector<8x128xf32>
    %237 = arith.divf %235, %236 : vector<8x128xf32>
    %238 = vector.extract_strided_slice %225 {offsets = [0, 256], sizes = [8, 128], strides = [1, 1]} : vector<8x512xf32> to vector<8x128xf32>
    %239 = math.tanh %238 : vector<8x128xf32>
    %240 = vector.extract_strided_slice %225 {offsets = [0, 384], sizes = [8, 128], strides = [1, 1]} : vector<8x512xf32> to vector<8x128xf32>
    %241 = arith.negf %240 : vector<8x128xf32>
    %242 = math.exp %241 : vector<8x128xf32>
    %cst_68 = arith.constant 1.000000e+00 : f32
    %243 = vector.broadcast %cst_68 : f32 to vector<8x128xf32>
    %244 = arith.addf %243, %242 : vector<8x128xf32>
    %245 = arith.divf %243, %244 : vector<8x128xf32>
    %246 = arith.mulf %237, %218 : vector<8x128xf32>
    %247 = arith.mulf %231, %239 : vector<8x128xf32>
    %248 = arith.addf %246, %247 : vector<8x128xf32>
    %249 = math.tanh %248 : vector<8x128xf32>
    %250 = arith.mulf %245, %249 : vector<8x128xf32>
    %251 = arith.truncf %250 : vector<8x128xf32> to vector<8x128xbf16>
    %c0_69 = arith.constant 0 : index
    %c0_70 = arith.constant 0 : index
    %252 = vector.load %arg8[%c0_69, %c0_70] : memref<8x128xbf16, #tpu.memory_space<vmem>>, vector<8x128xbf16>
    tpu.vector_store %arg8[%c0_69, %c0_70], %251 {strides = array<i32>} : memref<8x128xbf16, #tpu.memory_space<vmem>>, vector<8x128xbf16>,
    %c0_71 = arith.constant 0 : index
    %c0_72 = arith.constant 0 : index
    %253 = vector.load %arg9[%c0_71, %c0_72] : memref<8x128xf32, #tpu.memory_space<vmem>>, vector<8x128xf32>
    tpu.vector_store %arg9[%c0_71, %c0_72], %248 {strides = array<i32>} : memref<8x128xf32, #tpu.memory_space<vmem>>, vector<8x128xf32>,
    %c0_i32_73 = arith.constant 0 : i32
    %254 = arith.cmpi eq, %arg0, %c0_i32_73 : i32
    %255 = arith.extui %254 : i1 to i32
    %c0_i32_74 = arith.constant 0 : i32
    %256 = arith.cmpi ne, %255, %c0_i32_74 : i32
    scf.if %256 {
      %257 = arith.extf %251 : vector<8x128xbf16> to vector<8x128xf32>
      %c0_75 = arith.constant 0 : index
      %c0_76 = arith.constant 0 : index
      %258 = vector.load %arg5[%c0_75, %c0_76] : memref<1x128xf32, #tpu.memory_space<vmem>>, vector<1x128xf32>
      %259 = vector.broadcast %258 : vector<1x128xf32> to vector<8x128xf32>
      %260 = arith.mulf %257, %259 : vector<8x128xf32>
      %cst_77 = arith.constant dense<0.000000e+00> : vector<8xf32>
      %261 = vector.multi_reduction <add>, %260, %cst_77 [1] : vector<8x128xf32> to vector<8xf32>
      %262 = vector.shape_cast %261 : vector<8xf32> to vector<8x1xf32>
      %c0_78 = arith.constant 0 : index
      %c0_79 = arith.constant 0 : index
      %263 = vector.load %arg6[%c0_78, %c0_79] : memref<1x1xf32, #tpu.memory_space<vmem>>, vector<1x1xf32>
      %264 = vector.broadcast %263 : vector<1x1xf32> to vector<8x1xf32>
      %265 = arith.addf %262, %264 : vector<8x1xf32>
      %266 = arith.negf %265 : vector<8x1xf32>
      %267 = math.exp %266 : vector<8x1xf32>
      %cst_80 = arith.constant 1.000000e+00 : f32
      %268 = vector.broadcast %cst_80 : f32 to vector<8x1xf32>
      %269 = arith.addf %268, %267 : vector<8x1xf32>
      %270 = arith.divf %268, %269 : vector<8x1xf32>
      %271 = vector.shape_cast %270 : vector<8x1xf32> to vector<8x1xf32>
      %272 = vector.broadcast %271 : vector<8x1xf32> to vector<8x128xf32>
      %c0_81 = arith.constant 0 : index
      %c0_82 = arith.constant 0 : index
      %273 = vector.load %arg7[%c0_81, %c0_82] : memref<8x128xf32, #tpu.memory_space<vmem>>, vector<8x128xf32>
      tpu.vector_store %arg7[%c0_81, %c0_82], %272 {strides = array<i32>} : memref<8x128xf32, #tpu.memory_space<vmem>>, vector<8x128xf32>,
    } else {
    }
    return
  }
  func.func @transform_0(%arg0: i32) -> (i32, i32) {
    %c0_i32 = arith.constant 0 : i32
    %c0_i32_0 = arith.constant 0 : i32
    return %arg0, %c0_i32 : i32, i32
  }
  func.func @transform_1(%arg0: i32) -> (i32, i32) {
    %c0_i32 = arith.constant 0 : i32
    %c0_i32_0 = arith.constant 0 : i32
    %c0_i32_1 = arith.constant 0 : i32
    return %c0_i32, %c0_i32_0 : i32, i32
  }
  func.func @transform_2(%arg0: i32) -> (i32, i32) {
    %c0_i32 = arith.constant 0 : i32
    %c0_i32_0 = arith.constant 0 : i32
    %c0_i32_1 = arith.constant 0 : i32
    return %c0_i32, %c0_i32_0 : i32, i32
  }
  func.func @transform_3(%arg0: i32) -> (i32, i32) {
    %c0_i32 = arith.constant 0 : i32
    %c0_i32_0 = arith.constant 0 : i32
    %c0_i32_1 = arith.constant 0 : i32
    return %c0_i32, %c0_i32_0 : i32, i32
  }
  func.func @transform_4(%arg0: i32) -> (i32, i32) {
    %c0_i32 = arith.constant 0 : i32
    %c0_i32_0 = arith.constant 0 : i32
    %c0_i32_1 = arith.constant 0 : i32
    return %c0_i32, %c0_i32_0 : i32, i32
  }
  func.func @transform_5(%arg0: i32) -> (i32, i32) {
    %c0_i32 = arith.constant 0 : i32
    %c0_i32_0 = arith.constant 0 : i32
    %c0_i32_1 = arith.constant 0 : i32
    return %c0_i32, %c0_i32_0 : i32, i32
  }
  func.func @transform_6(%arg0: i32) -> (i32, i32) {
    %c0_i32 = arith.constant 0 : i32
    %c0_i32_0 = arith.constant 0 : i32
    %c0_i32_1 = arith.constant 0 : i32
    return %c0_i32, %c0_i32_0 : i32, i32
  }
}

</mosaic_0001>

<bundles_post_ra>
// kernel: sentiment_classifier_forward.1
= control target key start
LH: loop header
LB: loop body
LE: loop exit
PB: predicated region body
PF: predicated region fallthrough
CT: control target
= control target key end

     0   :  { %v2569_v1 = vmov 0   ;;  %vm130_vm0 = vcmask 261120   ;;  %v50_v46 = vlaneseq  ;;  %s2562_s1 = inlined_call_operand.vmem [shape: bf16[32,512], index: 1, kind: input, shape index: {}]   ;;  %s2563_s0 = inlined_call_operand.vmem [shape: bf16[64,32], index: 0, kind: input, shape index: {}]   ;;  %s2564_s2 = inlined_call_operand.vmem [shape: bf16[128,512], index: 2, kind: input, shape index: {}]   ;;  %s2565_s3 = inlined_call_operand.vmem [shape: f32[1,512], index: 3, kind: input, shape index: {}]   ;;  %s2566_s5 = inlined_call_operand.<no memory space> [shape: f32[1,1], index: 5, kind: input, shape index: {}]   ;;  %s2567_s4 = inlined_call_operand.vmem [shape: f32[1,128], index: 4, kind: input, shape index: {}]   ;;  %s2568_s6 = inlined_call_operand.vmem [shape: f32[8,128], index: 6, kind: output, shape index: {}]  }
   0x1   :  { %v1524_v0 = vld [vmem:[%s2562_s1 + $0x24] ss:$16 sps:$4 sm:$0xff]   ;;  %175 = vmatprep.mubr.bf16.mxu0 %v2569_v1  ;;  %30 = vst [vmem:[#allocation2] sm:$0xf] %v2569_v1  ;;  %248 = vmatprep.mubr.bf16.mxu1 %v2569_v1  ;;  %v1526_v2 = vld [vmem:[%s2562_s1 + $0x2c] ss:$16 sps:$4 sm:$0xff]  }
   0x2   :  { %1523 = vset.pattern.permute.xlu0 %v2569_v1  ;;  %155 = vmatprep.subr.bf16.mxu0 %v1524_v0  ;;  %v1528_v3 = vld [vmem:[%s2562_s1 + $0x20] ss:$16 sps:$4 sm:$0xff]   ;;  %v1529_v4 = vld [vmem:[%s2562_s1 + $0x28] ss:$16 sps:$4 sm:$0xff]   ;;  %v1530_v5 = vld [vmem:[%s2562_s1 + $0x4] ss:$16 sps:$4 sm:$0xff]  }
   0x3   :  { %228 = vmatprep.subr.bf16.mxu1 %v1526_v2  ;;  %156 = vmatpush1.bf16.msra.mxu0 %v1528_v3  ;;  %v1532_v6 = vld [vmem:[%s2562_s1 + $0xc] ss:$16 sps:$4 sm:$0xff]   ;;  %v1534_v7 = vld [vmem:[%s2562_s1] ss:$16 sps:$4 sm:$0xff]   ;;  %v1535_v8 = vld [vmem:[%s2562_s1 + $0x8] ss:$16 sps:$4 sm:$0xff]  }
   0x4   :  { %229 = vmatpush1.bf16.msra.mxu1 %v1529_v4  ;;  %157 = vmatprep.subr.bf16.mxu0 %v1530_v5  ;;  %v1536_v9 = vld [vmem:[%s2563_s0] sm:$0xff]   ;;  %v1827_v11 = vld [vmem:[%s2564_s2 + $0xec] ss:$16 sps:$4 sm:$0xff]   ;;  %v1837_v13 = vld [vmem:[%s2564_s2 + $0xe8] ss:$16 sps:$4 sm:$0xff]   ;;  %v51_v47 = vshrl.u32 %v50_v46, 7 }
   0x5   :  { %230 = vmatprep.subr.bf16.mxu1 %v1532_v6  ;;  %v1822_v10 = vld [vmem:[%s2564_s2 + $0xe4] ss:$16 sps:$4 sm:$0xff]   ;;  %v1832_v12 = vld [vmem:[%s2564_s2 + $0xe0] ss:$16 sps:$4 sm:$0xff]   ;;  %v1849_v15 = vld [vmem:[%s2564_s2 + $0xcc] ss:$16 sps:$4 sm:$0xff]  }
   0x6   :  { %v1843_v14 = vld [vmem:[%s2564_s2 + $0xc4] ss:$16 sps:$4 sm:$0xff]   ;;  %v1856_v16 = vld [vmem:[%s2564_s2 + $0xc0] ss:$16 sps:$4 sm:$0xff]   ;;  %v1863_v17 = vld [vmem:[%s2564_s2 + $0xc8] ss:$16 sps:$4 sm:$0xff]  }
   0x7   :  { %158 = vmatpush1.bf16.msra.mxu0 %v1534_v7  ;;  %v1870_v18 = vld [vmem:[%s2564_s2 + $0xa4] ss:$16 sps:$4 sm:$0xff]   ;;  %v1549_v19 = vld [vmem:[%s2563_s0 + $0x8] sm:$0xff]   ;;  %v1885_v21 = vld [vmem:[%s2564_s2 + $0xa0] ss:$16 sps:$4 sm:$0xff]   ;;  %v60_v48 = vsub.s32 2, %v51_v47 }
   0x8   :  { %231 = vmatpush1.bf16.msra.mxu1 %v1535_v8  ;;  %519 = vmatprep.subr.bf16.mxu0 %v1822_v10  ;;  %v1880_v20 = vld [vmem:[%s2564_s2 + $0xac] ss:$16 sps:$4 sm:$0xff]   ;;  %v1892_v22 = vld [vmem:[%s2564_s2 + $0xa8] ss:$16 sps:$4 sm:$0xff]   ;;  %v1899_v23 = vld [vmem:[%s2564_s2 + $0x84] ss:$16 sps:$4 sm:$0xff]  }
   0x9   :  { %560 = vmatprep.subr.bf16.mxu1 %v1827_v11  ;;  %v1904_v24 = vld [vmem:[%s2564_s2 + $0x8c] ss:$16 sps:$4 sm:$0xff]   ;;  %v1911_v25 = vld [vmem:[%s2564_s2 + $0x80] ss:$16 sps:$4 sm:$0xff]   ;;  %v1918_v26 = vld [vmem:[%s2564_s2 + $0x88] ss:$16 sps:$4 sm:$0xff]  }
   0xa   :  { %1455 = vmatmul.mubr.msk.bf16.vlgmr.msra.gmra.mxu0 %vm130_vm0, %v1536_v9  ;;  %v1925_v27 = vld [vmem:[%s2564_s2 + $0x64] ss:$16 sps:$4 sm:$0xff]   ;;  %v1930_v28 = vld [vmem:[%s2564_s2 + $0x6c] ss:$16 sps:$4 sm:$0xff]   ;;  %v1940_v30 = vld [vmem:[%s2564_s2 + $0x60] ss:$16 sps:$4 sm:$0xff]  }
   0xb   :  { %1459 = vmatmul.mubr.msk.bf16.vlgmr.msra.gmra.mxu1 %vm130_vm0, %v1536_v9  ;;  %520 = vmatpush1.bf16.msra.mxu0 %v1832_v12  ;;  %v1562_v29 = vld [vmem:[%s2563_s0 + $0x10] sm:$0xff]   ;;  %v1945_v31 = vld [vmem:[%s2564_s2 + $0x68] ss:$16 sps:$4 sm:$0xff]   ;;  %v1959_v33 = vld [vmem:[%s2564_s2 + $0x4c] ss:$16 sps:$4 sm:$0xff]   ;;  %v52_v49 = vsub.s32 0, %v51_v47 }
   0xc   :  { %561 = vmatpush1.bf16.msra.mxu1 %v1837_v13  ;;  %521 = vmatprep.subr.bf16.mxu0 %v1843_v14  ;;  %v1952_v32 = vld [vmem:[%s2564_s2 + $0x44] ss:$16 sps:$4 sm:$0xff]   ;;  %v1966_v34 = vld [vmem:[%s2564_s2 + $0x40] ss:$16 sps:$4 sm:$0xff]   ;;  %v1971_v35 = vld [vmem:[%s2564_s2 + $0x48] ss:$16 sps:$4 sm:$0xff]  }
   0xd   :  { %562 = vmatprep.subr.bf16.mxu1 %v1849_v15  ;;  %185 = vmatprep.mubr.bf16.mxu0 %v2569_v1  ;;  %v1978_v36 = vld [vmem:[%s2564_s2 + $0x24] ss:$16 sps:$4 sm:$0xff]   ;;  %v1985_v37 = vld [vmem:[%s2564_s2 + $0x2c] ss:$16 sps:$4 sm:$0xff]   ;;  %v1997_v39 = vld [vmem:[%s2564_s2 + $0x20] ss:$16 sps:$4 sm:$0xff]  }
   0xe   :  { %258 = vmatprep.mubr.bf16.mxu1 %v2569_v1  ;;  %v1575_v38 = vld [vmem:[%s2563_s0 + $0x18] sm:$0xff]   ;;  %v2009_v41 = vld [vmem:[%s2564_s2 + $0x4] ss:$16 sps:$4 sm:$0xff]   ;;  %v2023_v43 = vld [vmem:[%s2564_s2] ss:$16 sps:$4 sm:$0xff]   ;;  %v64_v50 = vsub.s32 3, %v51_v47 }
   0xf   :  { %522 = vmatpush1.bf16.msra.mxu0 %v1856_v16  ;;  %v2002_v40 = vld [vmem:[%s2564_s2 + $0x28] ss:$16 sps:$4 sm:$0xff]   ;;  %v2014_v42 = vld [vmem:[%s2564_s2 + $0xc] ss:$16 sps:$4 sm:$0xff]   ;;  %v321_v45 = vld [vmem:[#allocation2] sm:$0xf] }
  0x10   :  { %563 = vmatpush1.bf16.msra.mxu1 %v1863_v17  ;;  %523 = vmatprep.subr.bf16.mxu0 %v1870_v18  ;;  %v2028_v44 = vld [vmem:[%s2564_s2 + $0x8] ss:$16 sps:$4 sm:$0xff]   ;;  %v48_v51 = vld [vmem:[%s2565_s3] sm:$0xf]  ;;  %v56_v55 = vsub.s32 1, %v51_v47 }
  0x11   :  { %564 = vmatprep.subr.bf16.mxu1 %v1880_v20  ;;  %v2079_v54 = vrot.slane %v48_v51, %v60_v48  ;;  %v53_v58 = vrot.slane %v48_v51, %v52_v49  ;;  %v2085_v59 = vrot.slane %v48_v51, %v64_v50 }
  0x12   :  { %1456 = vmatmul.mubr.msk.bf16.gmra.mxu0 %vm130_vm0, %v1549_v19  ;;  %v57_v62 = vrot.slane %v48_v51, %v56_v55 }
  0x13   :  { %1460 = vmatmul.mubr.msk.bf16.gmra.mxu1 %vm130_vm0, %v1549_v19  ;;  %524 = vmatpush1.bf16.msra.mxu0 %v1885_v21 }
  0x14   :  { %565 = vmatpush1.bf16.msra.mxu1 %v1892_v22  ;;  %525 = vmatprep.subr.bf16.mxu0 %v1899_v23 }
  0x15   :  { %566 = vmatprep.subr.bf16.mxu1 %v1904_v24  ;;  %195 = vmatprep.mubr.bf16.mxu0 %v2569_v1 }
  0x16   :  { %268 = vmatprep.mubr.bf16.mxu1 %v2569_v1 }
  0x17   :  { %526 = vmatpush1.bf16.msra.mxu0 %v1911_v25 }
  0x18   :  { %567 = vmatpush1.bf16.msra.mxu1 %v1918_v26  ;;  %527 = vmatprep.subr.bf16.mxu0 %v1925_v27 }
  0x19   :  { %568 = vmatprep.subr.bf16.mxu1 %v1930_v28 }
  0x1a   :  { %1457 = vmatmul.mubr.msk.bf16.gmra.mxu0 %vm130_vm0, %v1562_v29 }
  0x1b   :  { %1461 = vmatmul.mubr.msk.bf16.gmra.mxu1 %vm130_vm0, %v1562_v29  ;;  %528 = vmatpush1.bf16.msra.mxu0 %v1940_v30 }
  0x1c   :  { %569 = vmatpush1.bf16.msra.mxu1 %v1945_v31  ;;  %529 = vmatprep.subr.bf16.mxu0 %v1952_v32 }
  0x1d   :  { %570 = vmatprep.subr.bf16.mxu1 %v1959_v33  ;;  %205 = vmatprep.mubr.bf16.mxu0 %v2569_v1 }
  0x1e   :  { %278 = vmatprep.mubr.bf16.mxu1 %v2569_v1 }
  0x1f   :  { %530 = vmatpush1.bf16.msra.mxu0 %v1966_v34 }
  0x20   :  { %571 = vmatpush1.bf16.msra.mxu1 %v1971_v35  ;;  %531 = vmatprep.subr.bf16.mxu0 %v1978_v36 }
  0x21   :  { %572 = vmatprep.subr.bf16.mxu1 %v1985_v37 }
  0x22   :  { %1458 = vmatmul.mubr.msk.bf16.gmra.mxu0 %vm130_vm0, %v1575_v38 }
  0x23   :  { %1462 = vmatmul.mubr.msk.bf16.gmra.mxu1 %vm130_vm0, %v1575_v38  ;;  %532 = vmatpush1.bf16.msra.mxu0 %v1997_v39 }
  0x24   :  { %573 = vmatpush1.bf16.msra.mxu1 %v2002_v40  ;;  %533 = vmatprep.subr.bf16.mxu0 %v2009_v41 }
  0x25   :  { %574 = vmatprep.subr.bf16.mxu1 %v2014_v42  ;;  %551 = vmatprep.mubr.bf16.mxu0 %v2569_v1 }
  0x26   :  { %592 = vmatprep.mubr.bf16.mxu1 %v2569_v1 }
  0x27   :  { %534 = vmatpush1.bf16.msra.mxu0 %v2023_v43 }
  0x28   :  { %575 = vmatpush1.bf16.msra.mxu1 %v2028_v44  ;;  %630 = vmatprep.subr.bf16.mxu0 %v1822_v10 }
  0x29   :  { %671 = vmatprep.subr.bf16.mxu1 %v1827_v11 }
  0x2a   :  { %552 = vmatmul.mubr.bf16.vlgmr.msra.gmra.mxu0 %v321_v45 }
  0x2b   :  { %593 = vmatmul.mubr.bf16.vlgmr.msra.gmra.mxu1 %v321_v45  ;;  %631 = vmatpush1.bf16.msra.mxu0 %v1832_v12 }
  0x2c   :  { %672 = vmatpush1.bf16.msra.mxu1 %v1837_v13  ;;  %632 = vmatprep.subr.bf16.mxu0 %v1843_v14 }
  0x2d   :  { %673 = vmatprep.subr.bf16.mxu1 %v1849_v15  ;;  %662 = vmatprep.mubr.bf16.mxu0 %v2569_v1 }
  0x2e   :  { %703 = vmatprep.mubr.bf16.mxu1 %v2569_v1 }
  0x2f   :  { %633 = vmatpush1.bf16.msra.mxu0 %v1856_v16 }
  0x30   :  { %674 = vmatpush1.bf16.msra.mxu1 %v1863_v17  ;;  %634 = vmatprep.subr.bf16.mxu0 %v1870_v18 }
  0x31   :  { %675 = vmatprep.subr.bf16.mxu1 %v1880_v20 }
  0x33   :  { %635 = vmatpush1.bf16.msra.mxu0 %v1885_v21 }
  0x34   :  { %676 = vmatpush1.bf16.msra.mxu1 %v1892_v22  ;;  %636 = vmatprep.subr.bf16.mxu0 %v1899_v23 }
  0x35   :  { %677 = vmatprep.subr.bf16.mxu1 %v1904_v24 }
  0x37   :  { %637 = vmatpush1.bf16.msra.mxu0 %v1911_v25 }
  0x38   :  { %678 = vmatpush1.bf16.msra.mxu1 %v1918_v26  ;;  %638 = vmatprep.subr.bf16.mxu0 %v1925_v27 }
  0x39   :  { %679 = vmatprep.subr.bf16.mxu1 %v1930_v28 }
  0x3b   :  { %639 = vmatpush1.bf16.msra.mxu0 %v1940_v30 }
  0x3c   :  { %680 = vmatpush1.bf16.msra.mxu1 %v1945_v31  ;;  %640 = vmatprep.subr.bf16.mxu0 %v1952_v32 }
  0x3d   :  { %681 = vmatprep.subr.bf16.mxu1 %v1959_v33 }
  0x3f   :  { %641 = vmatpush1.bf16.msra.mxu0 %v1966_v34 }
  0x40   :  { %682 = vmatpush1.bf16.msra.mxu1 %v1971_v35  ;;  %642 = vmatprep.subr.bf16.mxu0 %v1978_v36 }
  0x41   :  { %683 = vmatprep.subr.bf16.mxu1 %v1985_v37 }
  0x43   :  { %643 = vmatpush1.bf16.msra.mxu0 %v1997_v39 }
  0x44   :  { %684 = vmatpush1.bf16.msra.mxu1 %v2002_v40  ;;  %644 = vmatprep.subr.bf16.mxu0 %v2009_v41 }
  0x45   :  { %685 = vmatprep.subr.bf16.mxu1 %v2014_v42 }
  0x47   :  { %645 = vmatpush1.bf16.msra.mxu0 %v2023_v43 }
  0x48   :  { %686 = vmatpush1.bf16.msra.mxu1 %v2028_v44  ;;  %741 = vmatprep.subr.bf16.mxu0 %v1822_v10 }
  0x49   :  { %782 = vmatprep.subr.bf16.mxu1 %v1827_v11 }
  0xca   :  { %v2075_v52 = vpop.f32.mrf.mxu0 }
  0xcb   :  { %v2077_v53 = vpop.f32.mrf.mxu1 }
  0xcc   :  { %v2081_v56 = vpop.f32.mrf.mxu0 }
  0xcd   :  { %v2083_v57 = vpop.f32.mrf.mxu1 }
  0xce   :  { %v181_v60 = vpop.f32.mrf.mxu0 }
  0xcf   :  { %v254_v61 = vpop.f32.mrf.mxu1  ;;  %v2087_v63 = vadd.f32 %v181_v60, %v53_v58 }
  0xd0   :  { %v2090_v0 = vadd.f32 %v254_v61, %v2079_v54  ;;  %v183_v2 = vpop.f32.mrf.mxu0 }
  0xd1   :  { %v256_v3 = vpop.f32.mrf.mxu1  ;;  %v2092_v4 = vadd.f32 %v183_v2, %v57_v62 }
  0xd2   :  { %v2095_v5 = vadd.f32 %v256_v3, %v2085_v59  ;;  %v187_v6 = vpop.f32.mrf.mxu0 }
  0xd3   :  { %v260_v7 = vpop.f32.mrf.mxu1  ;;  %v2097_v8 = vadd.f32 %v187_v6, %v53_v58 }
  0xd4   :  { %v2100_v9 = vadd.f32 %v260_v7, %v2079_v54  ;;  %v189_v19 = vpop.f32.mrf.mxu0 }
  0xd5   :  { %v262_v29 = vpop.f32.mrf.mxu1  ;;  %v2102_v38 = vadd.f32 %v189_v19, %v57_v62 }
  0xd6   :  { %2571 = vst [vmem:[#allocation6_spill] sm:$0xff] %v2100_v9  ;;  %v2105_v45 = vadd.f32 %v262_v29, %v2085_v59  ;;  %v191_v46 = vpop.f32.mrf.mxu0 }
  0xd7   :  { %v264_v47 = vpop.f32.mrf.mxu1  ;;  %v2107_v48 = vadd.f32 %v191_v46, %v53_v58 }
  0xd8   :  { %v2110_v49 = vadd.f32 %v264_v47, %v2079_v54  ;;  %v193_v50 = vpop.f32.mrf.mxu0 }
  0xd9   :  { %2572 = vst [vmem:[#allocation7_spill] sm:$0xff] %v2107_v48  ;;  %v266_v51 = vpop.f32.mrf.mxu1  ;;  %v2112_v55 = vadd.f32 %v193_v50, %v57_v62 }
  0xda   :  { %2573 = vst [vmem:[#allocation8_spill] sm:$0xff] %v2110_v49  ;;  %v2115_v60 = vadd.f32 %v266_v51, %v2085_v59  ;;  %v197_v61 = vpop.f32.mrf.mxu0 }
  0xdb   :  { %2574 = vst [vmem:[#allocation9_spill] sm:$0xff] %v2112_v55  ;;  %v270_v2 = vpop.f32.mrf.mxu1  ;;  %v2117_v3 = vadd.f32 %v197_v61, %v53_v58 }
  0xdc   :  { %2575 = vst [vmem:[#allocation10_spill] sm:$0xff] %v2115_v60  ;;  %v2120_v6 = vadd.f32 %v270_v2, %v2079_v54  ;;  %v199_v7 = vpop.f32.mrf.mxu0 }
  0xdd   :  { %2576 = vst [vmem:[#allocation11_spill] sm:$0xff] %v2117_v3  ;;  %v272_v19 = vpop.f32.mrf.mxu1  ;;  %v2122_v29 = vadd.f32 %v199_v7, %v57_v62 }
  0xde   :  { %2577 = vst [vmem:[#allocation12_spill] sm:$0xff] %v2120_v6  ;;  %v2125_v46 = vadd.f32 %v272_v19, %v2085_v59  ;;  %v201_v47 = vpop.f32.mrf.mxu0 }
  0xdf   :  { %2578 = vst [vmem:[#allocation13_spill] sm:$0xff] %v2122_v29  ;;  %v274_v50 = vpop.f32.mrf.mxu1  ;;  %v2127_v1 = vadd.f32 %v201_v47, %v53_v58 }
  0xe0   :  { %2579 = vst [vmem:[#allocation14_spill] sm:$0xff] %v2125_v46  ;;  %v2130_v51 = vadd.f32 %v274_v50, %v2079_v54  ;;  %v203_v49 = vpop.f32.mrf.mxu0 }
  0xe1   :  { %2580 = vst [vmem:[#allocation15_spill] sm:$0xff] %v2127_v1  ;;  %v276_v61 = vpop.f32.mrf.mxu1  ;;  %v2132_v3 = vadd.f32 %v203_v49, %v57_v62 }
  0xe2   :  { %2581 = vst [vmem:[#allocation16_spill] sm:$0xff] %v2130_v51  ;;  %v2135_v2 = vadd.f32 %v276_v61, %v2085_v59  ;;  %v207_v6 = vpop.f32.mrf.mxu0 }
  0xe3   :  { %2582 = vst [vmem:[#allocation17_spill] sm:$0xff] %v2132_v3  ;;  %v280_v7 = vpop.f32.mrf.mxu1  ;;  %v2137_v29 = vadd.f32 %v207_v6, %v53_v58 }
  0xe4   :  { %2583 = vst [vmem:[#allocation18_spill] sm:$0xff] %v2135_v2  ;;  %v2140_v19 = vadd.f32 %v280_v7, %v2079_v54  ;;  %v209_v46 = vpop.f32.mrf.mxu0 }
  0xe5   :  { %2584 = vst [vmem:[#allocation19_spill] sm:$0xff] %v2137_v29  ;;  %v282_v47 = vpop.f32.mrf.mxu1  ;;  %v2142_v1 = vadd.f32 %v209_v46, %v57_v62  ;;  %v178_v29 = vadd.f32 %v2075_v52, %v53_v58 }
  0xe6   :  { %2585 = vst [vmem:[#allocation20_spill] sm:$0xff] %v2140_v19  ;;  %v2145_v50 = vadd.f32 %v282_v47, %v2085_v59  ;;  %v211_v51 = vpop.f32.mrf.mxu0  ;;  %v180_v47 = vadd.f32 %v2081_v56, %v57_v62 }
  0xe7   :  { %2586 = vst [vmem:[#allocation21_spill] sm:$0xff] %v2142_v1  ;;  %v284_v49 = vpop.f32.mrf.mxu1  ;;  %v2147_v3 = vadd.f32 %v211_v51, %v53_v58  ;;  %v253_v58 = vadd.f32 %v2083_v57, %v2085_v59 }
  0xe8   :  { %2587 = vst [vmem:[#allocation22_spill] sm:$0xff] %v2145_v50  ;;  %v2150_v61 = vadd.f32 %v284_v49, %v2079_v54  ;;  %v213_v2 = vpop.f32.mrf.mxu0 }
  0xe9   :  { %2588 = vst [vmem:[#allocation23_spill] sm:$0xff] %v2147_v3  ;;  %v286_v6 = vpop.f32.mrf.mxu1  ;;  %v2153_v7 = vadd.f32 %v213_v2, %v57_v62 }
  0xea   :  { %2589 = vst [vmem:[#allocation24_spill] sm:$0xff] %v2150_v61  ;;  %v2156_v19 = vadd.f32 %v286_v6, %v2085_v59  ;;  %v553_v46 = vpop.f32.mrf.mxu0  ;;  %v251_v6 = vadd.f32 %v2077_v53, %v2079_v54 }
  0xeb   :  { %v594_v1 = vpop.f32.mrf.mxu1  ;;  %v554_v50 = vadd.f32 %v553_v46, %v178_v29 }
  0xec   :  { %v555_v60 = vpop.f32.mrf.mxu0  ;;  %v595_v29 = vadd.f32 %v594_v1, %v251_v6 }
  0xed   :  { %v596_v51 = vpop.f32.mrf.mxu1  ;;  %v1495_v3 = vmul.f32 -1.442695, %v554_v50  ;;  %v556_v55 = vadd.f32 %v555_v60, %v180_v47 }
  0xee   :  { %v557_v49 = vpop.f32.mrf.mxu0  ;;  %v597_v2 = vadd.f32 %v596_v51, %v253_v58 }
  0xef   :  { %v598_v61 = vpop.f32.mrf.mxu1  ;;  %1588 = vpow2.f32 %v1495_v3  ;;  %v1496_v48 = vmul.f32 -1.442695, %v556_v55  ;;  %v2590_v49 = vmov 0  }
  0xf0   :  { %v558_v9 = vpop.f32.mrf.mxu0  ;;  %v1497_v56 = vmul.f32 -1.442695, %v597_v2 }
  0xf1   :  { %v599_v52 = vpop.f32.mrf.mxu1  ;;  %1590 = vpow2.f32 %v1496_v48 }
  0xf2   :  { %1592 = vpow2.f32 %v1497_v56 }
  0xfc   :  { %v1589_v62 = vpop.eup %1588 }
  0xfd   :  { %v604_v46 = vadd.f32 1.0, %v1589_v62 }
  0xfe   :  { %v1591_v50 = vpop.eup %1590 }
  0xff   :  { %1594 = vrcp.f32 %v604_v46  ;;  %v610_v60 = vadd.f32 1.0, %v1591_v50  ;;  %v1593_v9 = vpop.eup %1592 }
 0x100   :  { %1596 = vtanh.f32 %v595_v29  ;;  %v617_v61 = vadd.f32 1.0, %v1593_v9 }
 0x101   :  { %1598 = vrcp.f32 %v610_v60 }
 0x102   :  { %1600 = vrcp.f32 %v617_v61 }
 0x10c   :  { %v1595_v55 = vpop.eup %1594 }
 0x10d   :  { %v1597_v48 = vpop.eup %1596 }
 0x10e   :  { %v1599_v3 = vpop.eup %1598  ;;  %v621_v59 = vmul.f32 %v1597_v48, %v1595_v55 }
 0x10f   :  { %v620_v57 = vmul.f32 0.0, %v1599_v3  ;;  %v1601_v1 = vpop.eup %1600 }
 0x111   :  { %v2163_v47 = vadd.f32 %v621_v59, %v620_v57 }
 0x113   :  { %1602 = vtanh.f32 %v2163_v47 }
 0x120   :  { %v1603_v53 = vpop.eup %1602 }
 0x121   :  { %v624_v54 = vmul.f32 %v1603_v53, %v1601_v1 }
 0x123   :  { %v625_v51 = vpack.c.bf16 %v624_v54, %v624_v54 }
 0x125   :  { %663 = vmatmul.mubr.bf16.vlgmr.msra.gmra.mxu0 %v625_v51  ;;  %704 = vmatmul.mubr.bf16.vlgmr.msra.gmra.mxu1 %v625_v51 }
 0x126   :  { %742 = vmatpush1.bf16.msra.mxu0 %v1832_v12  ;;  %783 = vmatpush1.bf16.msra.mxu1 %v1837_v13 }
 0x127   :  { %743 = vmatprep.subr.bf16.mxu0 %v1843_v14  ;;  %784 = vmatprep.subr.bf16.mxu1 %v1849_v15 }
 0x128   :  { %773 = vmatprep.mubr.bf16.mxu0 %v2590_v49  ;;  %814 = vmatprep.mubr.bf16.mxu1 %v2590_v49 }
 0x12a   :  { %744 = vmatpush1.bf16.msra.mxu0 %v1856_v16  ;;  %785 = vmatpush1.bf16.msra.mxu1 %v1863_v17 }
 0x12b   :  { %745 = vmatprep.subr.bf16.mxu0 %v1870_v18  ;;  %786 = vmatprep.subr.bf16.mxu1 %v1880_v20 }
 0x12e   :  { %746 = vmatpush1.bf16.msra.mxu0 %v1885_v21  ;;  %787 = vmatpush1.bf16.msra.mxu1 %v1892_v22 }
 0x12f   :  { %747 = vmatprep.subr.bf16.mxu0 %v1899_v23  ;;  %788 = vmatprep.subr.bf16.mxu1 %v1904_v24 }
 0x132   :  { %748 = vmatpush1.bf16.msra.mxu0 %v1911_v25  ;;  %789 = vmatpush1.bf16.msra.mxu1 %v1918_v26 }
 0x133   :  { %749 = vmatprep.subr.bf16.mxu0 %v1925_v27  ;;  %790 = vmatprep.subr.bf16.mxu1 %v1930_v28 }
 0x136   :  { %750 = vmatpush1.bf16.msra.mxu0 %v1940_v30  ;;  %791 = vmatpush1.bf16.msra.mxu1 %v1945_v31 }
 0x137   :  { %751 = vmatprep.subr.bf16.mxu0 %v1952_v32  ;;  %792 = vmatprep.subr.bf16.mxu1 %v1959_v33 }
 0x13a   :  { %752 = vmatpush1.bf16.msra.mxu0 %v1966_v34  ;;  %793 = vmatpush1.bf16.msra.mxu1 %v1971_v35 }
 0x13b   :  { %753 = vmatprep.subr.bf16.mxu0 %v1978_v36  ;;  %794 = vmatprep.subr.bf16.mxu1 %v1985_v37 }
 0x13e   :  { %754 = vmatpush1.bf16.msra.mxu0 %v1997_v39  ;;  %795 = vmatpush1.bf16.msra.mxu1 %v2002_v40 }
 0x13f   :  { %755 = vmatprep.subr.bf16.mxu0 %v2009_v41  ;;  %796 = vmatprep.subr.bf16.mxu1 %v2014_v42 }
 0x142   :  { %756 = vmatpush1.bf16.msra.mxu0 %v2023_v43  ;;  %797 = vmatpush1.bf16.msra.mxu1 %v2028_v44 }
 0x143   :  { %852 = vmatprep.subr.bf16.mxu0 %v1822_v10  ;;  %893 = vmatprep.subr.bf16.mxu1 %v1827_v11 }
 0x1e5   :  { %v664_v52 = vpop.f32.mrf.mxu0  ;;  %v705_v58 = vpop.f32.mrf.mxu1 }
 0x1e6   :  { %v665_v2 = vadd.f32 %v664_v52, %v2087_v63  ;;  %v706_v3 = vadd.f32 %v705_v58, %v2090_v0 }
 0x1e7   :  { %v666_v6 = vpop.f32.mrf.mxu0  ;;  %v707_v56 = vpop.f32.mrf.mxu1 }
 0x1e8   :  { %v1498_v62 = vmul.f32 -1.442695, %v665_v2  ;;  %v667_v29 = vadd.f32 %v666_v6, %v2092_v4  ;;  %v708_v48 = vadd.f32 %v707_v56, %v2095_v5 }
 0x1e9   :  { %v668_v46 = vpop.f32.mrf.mxu0  ;;  %v709_v50 = vpop.f32.mrf.mxu1 }
 0x1ea   :  { %1604 = vpow2.f32 %v1498_v62  ;;  %v1499_v60 = vmul.f32 -1.442695, %v667_v29  ;;  %v1500_v61 = vmul.f32 -1.442695, %v708_v48 }
 0x1eb   :  { %v669_v9 = vpop.f32.mrf.mxu0  ;;  %v710_v55 = vpop.f32.mrf.mxu1 }
 0x1ec   :  { %1606 = vpow2.f32 %v1499_v60 }
 0x1ed   :  { %1608 = vtanh.f32 %v706_v3 }
 0x1ee   :  { %1610 = vpow2.f32 %v1500_v61 }
 0x1f7   :  { %v1605_v57 = vpop.eup %1604 }
 0x1f8   :  { %v715_v59 = vadd.f32 1.0, %v1605_v57 }
 0x1f9   :  { %v1607_v63 = vpop.eup %1606 }
 0x1fa   :  { %1612 = vrcp.f32 %v715_v59  ;;  %v721_v1 = vadd.f32 1.0, %v1607_v63  ;;  %v1609_v4 = vpop.eup %1608 }
 0x1fb   :  { %v1611_v53 = vpop.eup %1610 }
 0x1fc   :  { %1614 = vrcp.f32 %v721_v1  ;;  %v728_v2 = vadd.f32 1.0, %v1611_v53  ;;  %v2591_v1 = vld [vmem:[#allocation6_spill] sm:$0xff] }
 0x1fe   :  { %1616 = vrcp.f32 %v728_v2 }
 0x207   :  { %v1613_v54 = vpop.eup %1612 }
 0x208   :  { %v732_v51 = vmul.f32 %v1613_v54, %v1609_v4 }
 0x209   :  { %v1615_v52 = vpop.eup %1614 }
 0x20a   :  { %v731_v6 = vmul.f32 %v1615_v52, %v2163_v47 }
 0x20b   :  { %v1617_v0 = vpop.eup %1616 }
 0x20c   :  { %v2205_v5 = vadd.f32 %v732_v51, %v731_v6 }
 0x20e   :  { %1618 = vtanh.f32 %v2205_v5 }
 0x21b   :  { %v1619_v58 = vpop.eup %1618 }
 0x21c   :  { %v735_v56 = vmul.f32 %v1619_v58, %v1617_v0 }
 0x21e   :  { %v736_v62 = vpack.c.bf16 %v735_v56, %v735_v56 }
 0x220   :  { %774 = vmatmul.mubr.bf16.vlgmr.msra.gmra.mxu0 %v736_v62  ;;  %815 = vmatmul.mubr.bf16.vlgmr.msra.gmra.mxu1 %v736_v62 }
 0x221   :  { %853 = vmatpush1.bf16.msra.mxu0 %v1832_v12  ;;  %894 = vmatpush1.bf16.msra.mxu1 %v1837_v13 }
 0x222   :  { %854 = vmatprep.subr.bf16.mxu0 %v1843_v14  ;;  %895 = vmatprep.subr.bf16.mxu1 %v1849_v15 }
 0x223   :  { %884 = vmatprep.mubr.bf16.mxu0 %v2590_v49  ;;  %925 = vmatprep.mubr.bf16.mxu1 %v2590_v49 }
 0x225   :  { %855 = vmatpush1.bf16.msra.mxu0 %v1856_v16  ;;  %896 = vmatpush1.bf16.msra.mxu1 %v1863_v17 }
 0x226   :  { %856 = vmatprep.subr.bf16.mxu0 %v1870_v18  ;;  %897 = vmatprep.subr.bf16.mxu1 %v1880_v20 }
 0x229   :  { %857 = vmatpush1.bf16.msra.mxu0 %v1885_v21  ;;  %898 = vmatpush1.bf16.msra.mxu1 %v1892_v22 }
 0x22a   :  { %858 = vmatprep.subr.bf16.mxu0 %v1899_v23  ;;  %899 = vmatprep.subr.bf16.mxu1 %v1904_v24 }
 0x22d   :  { %859 = vmatpush1.bf16.msra.mxu0 %v1911_v25  ;;  %900 = vmatpush1.bf16.msra.mxu1 %v1918_v26 }
 0x22e   :  { %860 = vmatprep.subr.bf16.mxu0 %v1925_v27  ;;  %901 = vmatprep.subr.bf16.mxu1 %v1930_v28 }
 0x231   :  { %861 = vmatpush1.bf16.msra.mxu0 %v1940_v30  ;;  %902 = vmatpush1.bf16.msra.mxu1 %v1945_v31 }
 0x232   :  { %862 = vmatprep.subr.bf16.mxu0 %v1952_v32  ;;  %903 = vmatprep.subr.bf16.mxu1 %v1959_v33 }
 0x235   :  { %863 = vmatpush1.bf16.msra.mxu0 %v1966_v34  ;;  %904 = vmatpush1.bf16.msra.mxu1 %v1971_v35 }
 0x236   :  { %864 = vmatprep.subr.bf16.mxu0 %v1978_v36  ;;  %905 = vmatprep.subr.bf16.mxu1 %v1985_v37 }
 0x239   :  { %865 = vmatpush1.bf16.msra.mxu0 %v1997_v39  ;;  %906 = vmatpush1.bf16.msra.mxu1 %v2002_v40 }
 0x23a   :  { %866 = vmatprep.subr.bf16.mxu0 %v2009_v41  ;;  %907 = vmatprep.subr.bf16.mxu1 %v2014_v42 }
 0x23d   :  { %867 = vmatpush1.bf16.msra.mxu0 %v2023_v43  ;;  %908 = vmatpush1.bf16.msra.mxu1 %v2028_v44 }
 0x23e   :  { %963 = vmatprep.subr.bf16.mxu0 %v1822_v10  ;;  %1004 = vmatprep.subr.bf16.mxu1 %v1827_v11 }
 0x2e0   :  { %v775_v47 = vpop.f32.mrf.mxu0  ;;  %v816_v29 = vpop.f32.mrf.mxu1 }
 0x2e1   :  { %v776_v46 = vadd.f32 %v775_v47, %v2097_v8  ;;  %v817_v4 = vadd.f32 %v816_v29, %v2591_v1 }
 0x2e2   :  { %v777_v50 = vpop.f32.mrf.mxu0  ;;  %v818_v60 = vpop.f32.mrf.mxu1 }
 0x2e3   :  { %v1501_v9 = vmul.f32 -1.442695, %v776_v46  ;;  %v778_v55 = vadd.f32 %v777_v50, %v2102_v38  ;;  %v819_v63 = vadd.f32 %v818_v60, %v2105_v45 }
 0x2e4   :  { %v779_v48 = vpop.f32.mrf.mxu0  ;;  %v820_v3 = vpop.f32.mrf.mxu1 }
 0x2e5   :  { %1620 = vpow2.f32 %v1501_v9  ;;  %v1502_v61 = vmul.f32 -1.442695, %v778_v55  ;;  %v1503_v53 = vmul.f32 -1.442695, %v819_v63  ;;  %v2592_v9 = vld [vmem:[#allocation7_spill] sm:$0xff] }
 0x2e6   :  { %v780_v57 = vpop.f32.mrf.mxu0  ;;  %v821_v59 = vpop.f32.mrf.mxu1 }
 0x2e7   :  { %1622 = vpow2.f32 %v1502_v61  ;;  %v2593_v57 = vld [vmem:[#allocation9_spill] sm:$0xff] }
 0x2e8   :  { %1624 = vtanh.f32 %v817_v4 }
 0x2e9   :  { %1626 = vpow2.f32 %v1503_v53 }
 0x2f2   :  { %v1621_v54 = vpop.eup %1620 }
 0x2f3   :  { %v826_v51 = vadd.f32 1.0, %v1621_v54 }
 0x2f4   :  { %v1623_v8 = vpop.eup %1622 }
 0x2f5   :  { %1628 = vrcp.f32 %v826_v51  ;;  %v832_v52 = vadd.f32 1.0, %v1623_v8  ;;  %v1625_v38 = vpop.eup %1624  ;;  %v2594_v51 = vld [vmem:[#allocation10_spill] sm:$0xff]  ;;  %v2595_v8 = vld [vmem:[#allocation8_spill] sm:$0xff] }
 0x2f6   :  { %v1627_v2 = vpop.eup %1626 }
 0x2f7   :  { %1630 = vrcp.f32 %v832_v52  ;;  %v839_v56 = vadd.f32 1.0, %v1627_v2 }
 0x2f9   :  { %1632 = vrcp.f32 %v839_v56 }
 0x302   :  { %v1629_v6 = vpop.eup %1628 }
 0x303   :  { %v843_v0 = vmul.f32 %v1629_v6, %v1625_v38 }
 0x304   :  { %v1631_v58 = vpop.eup %1630 }
 0x305   :  { %v842_v62 = vmul.f32 %v1631_v58, %v2205_v5 }
 0x306   :  { %v1633_v47 = vpop.eup %1632 }
 0x307   :  { %v2247_v45 = vadd.f32 %v843_v0, %v842_v62 }
 0x309   :  { %1634 = vtanh.f32 %v2247_v45 }
 0x316   :  { %v1635_v29 = vpop.eup %1634 }
 0x317   :  { %v846_v46 = vmul.f32 %v1635_v29, %v1633_v47 }
 0x319   :  { %v847_v50 = vpack.c.bf16 %v846_v46, %v846_v46 }
 0x31b   :  { %885 = vmatmul.mubr.bf16.vlgmr.msra.gmra.mxu0 %v847_v50  ;;  %926 = vmatmul.mubr.bf16.vlgmr.msra.gmra.mxu1 %v847_v50 }
 0x31c   :  { %964 = vmatpush1.bf16.msra.mxu0 %v1832_v12  ;;  %1005 = vmatpush1.bf16.msra.mxu1 %v1837_v13 }
 0x31d   :  { %965 = vmatprep.subr.bf16.mxu0 %v1843_v14  ;;  %1006 = vmatprep.subr.bf16.mxu1 %v1849_v15 }
 0x31e   :  { %995 = vmatprep.mubr.bf16.mxu0 %v2590_v49  ;;  %1036 = vmatprep.mubr.bf16.mxu1 %v2590_v49 }
 0x320   :  { %966 = vmatpush1.bf16.msra.mxu0 %v1856_v16  ;;  %1007 = vmatpush1.bf16.msra.mxu1 %v1863_v17 }
 0x321   :  { %967 = vmatprep.subr.bf16.mxu0 %v1870_v18  ;;  %1008 = vmatprep.subr.bf16.mxu1 %v1880_v20 }
 0x324   :  { %968 = vmatpush1.bf16.msra.mxu0 %v1885_v21  ;;  %1009 = vmatpush1.bf16.msra.mxu1 %v1892_v22 }
 0x325   :  { %969 = vmatprep.subr.bf16.mxu0 %v1899_v23  ;;  %1010 = vmatprep.subr.bf16.mxu1 %v1904_v24 }
 0x328   :  { %970 = vmatpush1.bf16.msra.mxu0 %v1911_v25  ;;  %1011 = vmatpush1.bf16.msra.mxu1 %v1918_v26 }
 0x329   :  { %971 = vmatprep.subr.bf16.mxu0 %v1925_v27  ;;  %1012 = vmatprep.subr.bf16.mxu1 %v1930_v28 }
 0x32c   :  { %972 = vmatpush1.bf16.msra.mxu0 %v1940_v30  ;;  %1013 = vmatpush1.bf16.msra.mxu1 %v1945_v31 }
 0x32d   :  { %973 = vmatprep.subr.bf16.mxu0 %v1952_v32  ;;  %1014 = vmatprep.subr.bf16.mxu1 %v1959_v33 }
 0x330   :  { %974 = vmatpush1.bf16.msra.mxu0 %v1966_v34  ;;  %1015 = vmatpush1.bf16.msra.mxu1 %v1971_v35 }
 0x331   :  { %975 = vmatprep.subr.bf16.mxu0 %v1978_v36  ;;  %1016 = vmatprep.subr.bf16.mxu1 %v1985_v37 }
 0x334   :  { %976 = vmatpush1.bf16.msra.mxu0 %v1997_v39  ;;  %1017 = vmatpush1.bf16.msra.mxu1 %v2002_v40 }
 0x335   :  { %977 = vmatprep.subr.bf16.mxu0 %v2009_v41  ;;  %1018 = vmatprep.subr.bf16.mxu1 %v2014_v42 }
 0x338   :  { %978 = vmatpush1.bf16.msra.mxu0 %v2023_v43  ;;  %1019 = vmatpush1.bf16.msra.mxu1 %v2028_v44 }
 0x339   :  { %1074 = vmatprep.subr.bf16.mxu0 %v1822_v10  ;;  %1115 = vmatprep.subr.bf16.mxu1 %v1827_v11 }
 0x3db   :  { %v886_v5 = vpop.f32.mrf.mxu0  ;;  %v927_v60 = vpop.f32.mrf.mxu1 }
 0x3dc   :  { %v887_v55 = vadd.f32 %v886_v5, %v2592_v9  ;;  %v928_v11 = vadd.f32 %v927_v60, %v2595_v8 }
 0x3dd   :  { %v888_v48 = vpop.f32.mrf.mxu0  ;;  %v929_v3 = vpop.f32.mrf.mxu1 }
 0x3de   :  { %v1504_v61 = vmul.f32 -1.442695, %v887_v55  ;;  %v889_v59 = vadd.f32 %v888_v48, %v2593_v57  ;;  %v930_v10 = vadd.f32 %v929_v3, %v2594_v51 }
 0x3df   :  { %v890_v63 = vpop.f32.mrf.mxu0  ;;  %v931_v1 = vpop.f32.mrf.mxu1 }
 0x3e0   :  { %1636 = vpow2.f32 %v1504_v61  ;;  %v1505_v4 = vmul.f32 -1.442695, %v889_v59  ;;  %v1506_v52 = vmul.f32 -1.442695, %v930_v10 }
 0x3e1   :  { %v891_v53 = vpop.f32.mrf.mxu0  ;;  %v932_v54 = vpop.f32.mrf.mxu1 }
 0x3e2   :  { %1638 = vpow2.f32 %v1505_v4 }
 0x3e3   :  { %1640 = vtanh.f32 %v928_v11 }
 0x3e4   :  { %1642 = vpow2.f32 %v1506_v52 }
 0x3ed   :  { %v1637_v38 = vpop.eup %1636 }
 0x3ee   :  { %v937_v2 = vadd.f32 1.0, %v1637_v38  ;;  %v2347_v38 = vld [vmem:[%s2564_s2 + $0xe0] ss:$16 sps:$4 sm:$0xff]  }
 0x3ef   :  { %v1639_v6 = vpop.eup %1638 }
 0x3f0   :  { %1644 = vrcp.f32 %v937_v2  ;;  %v943_v0 = vadd.f32 1.0, %v1639_v6  ;;  %v1641_v58 = vpop.eup %1640  ;;  %v2353_v2 = vld [vmem:[%s2564_s2 + $0xe8] ss:$16 sps:$4 sm:$0xff]   ;;  %v2359_v6 = vld [vmem:[%s2564_s2 + $0xc4] ss:$16 sps:$4 sm:$0xff]  }
 0x3f1   :  { %v1643_v56 = vpop.eup %1642 }
 0x3f2   :  { %1646 = vrcp.f32 %v943_v0  ;;  %v950_v46 = vadd.f32 1.0, %v1643_v56  ;;  %v2365_v0 = vld [vmem:[%s2564_s2 + $0xcc] ss:$16 sps:$4 sm:$0xff]   ;;  %v2379_v56 = vld [vmem:[%s2564_s2 + $0xc8] ss:$16 sps:$4 sm:$0xff]  }
 0x3f4   :  { %1648 = vrcp.f32 %v950_v46  ;;  %v2403_v46 = vld [vmem:[%s2564_s2 + $0xa8] ss:$16 sps:$4 sm:$0xff]  }
 0x3fd   :  { %v1645_v62 = vpop.eup %1644 }
 0x3fe   :  { %v954_v47 = vmul.f32 %v1645_v62, %v1641_v58  ;;  %v2373_v58 = vld [vmem:[%s2564_s2 + $0xc0] ss:$16 sps:$4 sm:$0xff]   ;;  %v2385_v62 = vld [vmem:[%s2564_s2 + $0xa4] ss:$16 sps:$4 sm:$0xff]  }
 0x3ff   :  { %v1647_v29 = vpop.eup %1646 }
 0x400   :  { %v953_v50 = vmul.f32 %v1647_v29, %v2247_v45  ;;  %v2397_v29 = vld [vmem:[%s2564_s2 + $0xa0] ss:$16 sps:$4 sm:$0xff]  }
 0x401   :  { %v1649_v60 = vpop.eup %1648 }
 0x402   :  { %v2289_v5 = vadd.f32 %v954_v47, %v953_v50  ;;  %v2391_v47 = vld [vmem:[%s2564_s2 + $0xac] ss:$16 sps:$4 sm:$0xff]   ;;  %v2409_v50 = vld [vmem:[%s2564_s2 + $0x84] ss:$16 sps:$4 sm:$0xff]  }
 0x404   :  { %1650 = vtanh.f32 %v2289_v5 }
 0x411   :  { %v1651_v9 = vpop.eup %1650 }
 0x412   :  { %v957_v55 = vmul.f32 %v1651_v9, %v1649_v60  ;;  %v2421_v60 = vld [vmem:[%s2564_s2 + $0x80] ss:$16 sps:$4 sm:$0xff]   ;;  %v2427_v9 = vld [vmem:[%s2564_s2 + $0x88] ss:$16 sps:$4 sm:$0xff]  }
 0x414   :  { %v958_v48 = vpack.c.bf16 %v957_v55, %v957_v55  ;;  %v2433_v55 = vld [vmem:[%s2564_s2 + $0x64] ss:$16 sps:$4 sm:$0xff]  }
 0x416   :  { %996 = vmatmul.mubr.bf16.vlgmr.msra.gmra.mxu0 %v958_v48  ;;  %1037 = vmatmul.mubr.bf16.vlgmr.msra.gmra.mxu1 %v958_v48  ;;  %v2439_v48 = vld [vmem:[%s2564_s2 + $0x6c] ss:$16 sps:$4 sm:$0xff]  }
 0x417   :  { %1075 = vmatpush1.bf16.msra.mxu0 %v1832_v12  ;;  %1116 = vmatpush1.bf16.msra.mxu1 %v1837_v13  ;;  %v2327_v12 = vld [vmem:[%s2564_s2 + $0xe4] ss:$16 sps:$4 sm:$0xff]   ;;  %v2333_v13 = vld [vmem:[%s2564_s2 + $0xec] ss:$16 sps:$4 sm:$0xff]  }
 0x418   :  { %1076 = vmatprep.subr.bf16.mxu0 %v1843_v14  ;;  %1117 = vmatprep.subr.bf16.mxu1 %v1849_v15 }
 0x419   :  { %1106 = vmatprep.mubr.bf16.mxu0 %v2590_v49  ;;  %1147 = vmatprep.mubr.bf16.mxu1 %v2590_v49 }
 0x41b   :  { %1077 = vmatpush1.bf16.msra.mxu0 %v1856_v16  ;;  %1118 = vmatpush1.bf16.msra.mxu1 %v1863_v17  ;;  %v2596_v16 = vld [vmem:[#allocation11_spill] sm:$0xff] }
 0x41c   :  { %1078 = vmatprep.subr.bf16.mxu0 %v1870_v18  ;;  %1119 = vmatprep.subr.bf16.mxu1 %v1880_v20 }
 0x41f   :  { %1079 = vmatpush1.bf16.msra.mxu0 %v1885_v21  ;;  %1120 = vmatpush1.bf16.msra.mxu1 %v1892_v22  ;;  %v2597_v22 = vld [vmem:[#allocation13_spill] sm:$0xff] }
 0x420   :  { %1080 = vmatprep.subr.bf16.mxu0 %v1899_v23  ;;  %1121 = vmatprep.subr.bf16.mxu1 %v1904_v24 }
 0x423   :  { %1081 = vmatpush1.bf16.msra.mxu0 %v1911_v25  ;;  %1122 = vmatpush1.bf16.msra.mxu1 %v1918_v26 }
 0x424   :  { %1082 = vmatprep.subr.bf16.mxu0 %v1925_v27  ;;  %1123 = vmatprep.subr.bf16.mxu1 %v1930_v28 }
 0x427   :  { %1083 = vmatpush1.bf16.msra.mxu0 %v1940_v30  ;;  %1124 = vmatpush1.bf16.msra.mxu1 %v1945_v31  ;;  %v2598_v30 = vld [vmem:[#allocation14_spill] sm:$0xff] }
 0x428   :  { %1084 = vmatprep.subr.bf16.mxu0 %v1952_v32  ;;  %1125 = vmatprep.subr.bf16.mxu1 %v1959_v33  ;;  %v2599_v32 = vld [vmem:[#allocation12_spill] sm:$0xff] }
 0x42b   :  { %1085 = vmatpush1.bf16.msra.mxu0 %v1966_v34  ;;  %1126 = vmatpush1.bf16.msra.mxu1 %v1971_v35 }
 0x42c   :  { %1086 = vmatprep.subr.bf16.mxu0 %v1978_v36  ;;  %1127 = vmatprep.subr.bf16.mxu1 %v1985_v37 }
 0x42f   :  { %1087 = vmatpush1.bf16.msra.mxu0 %v1997_v39  ;;  %1128 = vmatpush1.bf16.msra.mxu1 %v2002_v40 }
 0x430   :  { %1088 = vmatprep.subr.bf16.mxu0 %v2009_v41  ;;  %1129 = vmatprep.subr.bf16.mxu1 %v2014_v42 }
 0x433   :  { %1089 = vmatpush1.bf16.msra.mxu0 %v2023_v43  ;;  %1130 = vmatpush1.bf16.msra.mxu1 %v2028_v44 }
 0x434   :  { %1185 = vmatprep.subr.bf16.mxu0 %v2327_v12  ;;  %1226 = vmatprep.subr.bf16.mxu1 %v2333_v13 }
 0x4d6   :  { %v997_v14 = vpop.f32.mrf.mxu0  ;;  %v1038_v15 = vpop.f32.mrf.mxu1 }
 0x4d7   :  { %v998_v17 = vadd.f32 %v997_v14, %v2596_v16  ;;  %v1039_v33 = vadd.f32 %v1038_v15, %v2599_v32  ;;  %v2445_v14 = vld [vmem:[%s2564_s2 + $0x60] ss:$16 sps:$4 sm:$0xff]   ;;  %v2451_v15 = vld [vmem:[%s2564_s2 + $0x68] ss:$16 sps:$4 sm:$0xff]   ;;  %v2457_v16 = vld [vmem:[%s2564_s2 + $0x44] ss:$16 sps:$4 sm:$0xff]  }
 0x4d8   :  { %v999_v18 = vpop.f32.mrf.mxu0  ;;  %v1040_v20 = vpop.f32.mrf.mxu1 }
 0x4d9   :  { %v1507_v21 = vmul.f32 -1.442695, %v998_v17  ;;  %v1000_v23 = vadd.f32 %v999_v18, %v2597_v22  ;;  %v1041_v31 = vadd.f32 %v1040_v20, %v2598_v30  ;;  %v2463_v17 = vld [vmem:[%s2564_s2 + $0x4c] ss:$16 sps:$4 sm:$0xff]   ;;  %v2469_v18 = vld [vmem:[%s2564_s2 + $0x40] ss:$16 sps:$4 sm:$0xff]  }
 0x4da   :  { %v1001_v24 = vpop.f32.mrf.mxu0  ;;  %v1042_v25 = vpop.f32.mrf.mxu1  ;;  %v2475_v20 = vld [vmem:[%s2564_s2 + $0x48] ss:$16 sps:$4 sm:$0xff]   ;;  %v2600_v22 = vld [vmem:[#allocation15_spill] sm:$0xff] }
 0x4db   :  { %1652 = vpow2.f32 %v1507_v21  ;;  %v1508_v26 = vmul.f32 -1.442695, %v1000_v23  ;;  %v1509_v34 = vmul.f32 -1.442695, %v1041_v31 }
 0x4dc   :  { %v1002_v27 = vpop.f32.mrf.mxu0  ;;  %v1043_v28 = vpop.f32.mrf.mxu1 }
 0x4dd   :  { %1654 = vpow2.f32 %v1508_v26  ;;  %v2603_v28 = vld [vmem:[#allocation16_spill] sm:$0xff] }
 0x4de   :  { %1656 = vtanh.f32 %v1039_v33 }
 0x4df   :  { %1658 = vpow2.f32 %v1509_v34 }
 0x4e8   :  { %v1653_v35 = vpop.eup %1652 }
 0x4e9   :  { %v1048_v45 = vadd.f32 1.0, %v1653_v35 }
 0x4ea   :  { %v1655_v3 = vpop.eup %1654 }
 0x4eb   :  { %1660 = vrcp.f32 %v1048_v45  ;;  %v1054_v61 = vadd.f32 1.0, %v1655_v3  ;;  %v1657_v57 = vpop.eup %1656 }
 0x4ec   :  { %v1659_v59 = vpop.eup %1658 }
 0x4ed   :  { %1662 = vrcp.f32 %v1054_v61  ;;  %v1061_v53 = vadd.f32 1.0, %v1659_v59 }
 0x4ef   :  { %1664 = vrcp.f32 %v1061_v53 }
 0x4f8   :  { %v1661_v63 = vpop.eup %1660 }
 0x4f9   :  { %v1065_v1 = vmul.f32 %v1661_v63, %v1657_v57 }
 0x4fa   :  { %v1663_v4 = vpop.eup %1662 }
 0x4fb   :  { %v1064_v54 = vmul.f32 %v1663_v4, %v2289_v5  ;;  %v2415_v5 = vld [vmem:[%s2564_s2 + $0x8c] ss:$16 sps:$4 sm:$0xff]  }
 0x4fc   :  { %v1665_v10 = vpop.eup %1664 }
 0x4fd   :  { %v2341_v51 = vadd.f32 %v1065_v1, %v1064_v54 }
 0x4ff   :  { %1666 = vtanh.f32 %v2341_v51 }
 0x50c   :  { %v1667_v8 = vpop.eup %1666 }
 0x50d   :  { %v1068_v11 = vmul.f32 %v1667_v8, %v1665_v10  ;;  %v1746_v8 = vld [vmem:[%s2564_s2 + $0x20] ss:$16 sps:$4 sm:$0xff]  }
 0x50f   :  { %v1069_v52 = vpack.c.bf16 %v1068_v11, %v1068_v11  ;;  %v1747_v11 = vld [vmem:[%s2564_s2 + $0x28] ss:$16 sps:$4 sm:$0xff]  }
 0x511   :  { %1107 = vmatmul.mubr.bf16.vlgmr.msra.gmra.mxu0 %v1069_v52  ;;  %1148 = vmatmul.mubr.bf16.vlgmr.msra.gmra.mxu1 %v1069_v52  ;;  %v1748_v52 = vld [vmem:[%s2564_s2 + $0x4] ss:$16 sps:$4 sm:$0xff]  }
 0x512   :  { %1186 = vmatpush1.bf16.msra.mxu0 %v2347_v38  ;;  %1227 = vmatpush1.bf16.msra.mxu1 %v2353_v2 }
 0x513   :  { %1187 = vmatprep.subr.bf16.mxu0 %v2359_v6  ;;  %1228 = vmatprep.subr.bf16.mxu1 %v2365_v0 }
 0x514   :  { %1217 = vmatprep.mubr.bf16.mxu0 %v2590_v49  ;;  %1258 = vmatprep.mubr.bf16.mxu1 %v2590_v49 }
 0x516   :  { %1188 = vmatpush1.bf16.msra.mxu0 %v2373_v58  ;;  %1229 = vmatpush1.bf16.msra.mxu1 %v2379_v56 }
 0x517   :  { %1189 = vmatprep.subr.bf16.mxu0 %v2385_v62  ;;  %1230 = vmatprep.subr.bf16.mxu1 %v2391_v47 }
 0x51a   :  { %1190 = vmatpush1.bf16.msra.mxu0 %v2397_v29  ;;  %1231 = vmatpush1.bf16.msra.mxu1 %v2403_v46 }
 0x51b   :  { %1191 = vmatprep.subr.bf16.mxu0 %v2409_v50  ;;  %1232 = vmatprep.subr.bf16.mxu1 %v2415_v5 }
 0x51e   :  { %1192 = vmatpush1.bf16.msra.mxu0 %v2421_v60  ;;  %1233 = vmatpush1.bf16.msra.mxu1 %v2427_v9 }
 0x51f   :  { %1193 = vmatprep.subr.bf16.mxu0 %v2433_v55  ;;  %1234 = vmatprep.subr.bf16.mxu1 %v2439_v48 }
 0x522   :  { %1194 = vmatpush1.bf16.msra.mxu0 %v2445_v14  ;;  %1235 = vmatpush1.bf16.msra.mxu1 %v2451_v15 }
 0x523   :  { %1195 = vmatprep.subr.bf16.mxu0 %v2457_v16  ;;  %1236 = vmatprep.subr.bf16.mxu1 %v2463_v17 }
 0x526   :  { %1196 = vmatpush1.bf16.msra.mxu0 %v2469_v18  ;;  %1237 = vmatpush1.bf16.msra.mxu1 %v2475_v20 }
 0x527   :  { %1197 = vmatprep.subr.bf16.mxu0 %v1978_v36  ;;  %1238 = vmatprep.subr.bf16.mxu1 %v1985_v37 }
 0x52a   :  { %1198 = vmatpush1.bf16.msra.mxu0 %v1997_v39  ;;  %1239 = vmatpush1.bf16.msra.mxu1 %v2002_v40  ;;  %v2601_v40 = vld [vmem:[#allocation17_spill] sm:$0xff] }
 0x52b   :  { %1199 = vmatprep.subr.bf16.mxu0 %v2009_v41  ;;  %1240 = vmatprep.subr.bf16.mxu1 %v2014_v42 }
 0x52e   :  { %1200 = vmatpush1.bf16.msra.mxu0 %v2023_v43  ;;  %1241 = vmatpush1.bf16.msra.mxu1 %v2028_v44  ;;  %v2602_v44 = vld [vmem:[#allocation18_spill] sm:$0xff] }
 0x52f   :  { %1296 = vmatprep.subr.bf16.mxu0 %v2327_v12  ;;  %1337 = vmatprep.subr.bf16.mxu1 %v2333_v13 }
 0x5d1   :  { %v1108_v21 = vpop.f32.mrf.mxu0  ;;  %v1149_v36 = vpop.f32.mrf.mxu1 }
 0x5d2   :  { %v1109_v37 = vadd.f32 %v1108_v21, %v2600_v22  ;;  %v1150_v13 = vadd.f32 %v1149_v36, %v2603_v28  ;;  %v11_v28 = vstv %s2566_s5 }
 0x5d3   :  { %v1110_v23 = vpop.f32.mrf.mxu0  ;;  %v1151_v39 = vpop.f32.mrf.mxu1  ;;  %12 = vst [vmem:[#allocation5] sm:$0x1] %v11_v28 }
 0x5d4   :  { %v1510_v24 = vmul.f32 -1.442695, %v1109_v37  ;;  %v1111_v25 = vadd.f32 %v1110_v23, %v2601_v40  ;;  %v1152_v12 = vadd.f32 %v1151_v39, %v2602_v44 }
 0x5d5   :  { %v1112_v41 = vpop.f32.mrf.mxu0  ;;  %v1153_v26 = vpop.f32.mrf.mxu1 }
 0x5d6   :  { %1668 = vpow2.f32 %v1510_v24  ;;  %v1511_v42 = vmul.f32 -1.442695, %v1111_v25  ;;  %v1512_v30 = vmul.f32 -1.442695, %v1152_v12 }
 0x5d7   :  { %v1113_v43 = vpop.f32.mrf.mxu0  ;;  %v1154_v27 = vpop.f32.mrf.mxu1 }
 0x5d8   :  { %1670 = vpow2.f32 %v1511_v42 }
 0x5d9   :  { %1672 = vtanh.f32 %v1150_v13 }
 0x5da   :  { %1674 = vpow2.f32 %v1512_v30 }
 0x5e3   :  { %v1669_v31 = vpop.eup %1668 }
 0x5e4   :  { %v1159_v32 = vadd.f32 1.0, %v1669_v31  ;;  %v2608_v31 = vld [vmem:[#allocation23_spill] sm:$0xff] }
 0x5e5   :  { %v1671_v33 = vpop.eup %1670 }
 0x5e6   :  { %1676 = vrcp.f32 %v1159_v32  ;;  %v1165_v34 = vadd.f32 1.0, %v1671_v33  ;;  %v1673_v35 = vpop.eup %1672 }
 0x5e7   :  { %v1675_v45 = vpop.eup %1674 }
 0x5e8   :  { %1678 = vrcp.f32 %v1165_v34  ;;  %v1172_v59 = vadd.f32 1.0, %v1675_v45 }
 0x5ea   :  { %1680 = vrcp.f32 %v1172_v59 }
 0x5f3   :  { %v1677_v3 = vpop.eup %1676 }
 0x5f4   :  { %v1176_v61 = vmul.f32 %v1677_v3, %v1673_v35 }
 0x5f5   :  { %v1679_v57 = vpop.eup %1678 }
 0x5f6   :  { %v1175_v63 = vmul.f32 %v1679_v57, %v2341_v51  ;;  %v1745_v51 = vld [vmem:[%s2564_s2 + $0x2c] ss:$16 sps:$4 sm:$0xff]  }
 0x5f7   :  { %v1681_v4 = vpop.eup %1680 }
 0x5f8   :  { %v2493_v1 = vadd.f32 %v1176_v61, %v1175_v63 }
 0x5fa   :  { %1682 = vtanh.f32 %v2493_v1 }
 0x607   :  { %v1683_v53 = vpop.eup %1682 }
 0x608   :  { %v1179_v54 = vmul.f32 %v1683_v53, %v1681_v4  ;;  %v2609_v4 = vld [vmem:[#allocation24_spill] sm:$0xff] }
 0x60a   :  { %v1180_v10 = vpack.c.bf16 %v1179_v54, %v1179_v54 }
 0x60c   :  { %1218 = vmatmul.mubr.bf16.vlgmr.msra.gmra.mxu0 %v1180_v10  ;;  %1259 = vmatmul.mubr.bf16.vlgmr.msra.gmra.mxu1 %v1180_v10 }
 0x60d   :  { %1297 = vmatpush1.bf16.msra.mxu0 %v2347_v38  ;;  %1338 = vmatpush1.bf16.msra.mxu1 %v2353_v2  ;;  %v1749_v38 = vld [vmem:[%s2564_s2 + $0xc] ss:$16 sps:$4 sm:$0xff]   ;;  %v1750_v2 = vld [vmem:[%s2564_s2] ss:$16 sps:$4 sm:$0xff]  }
 0x60e   :  { %1298 = vmatprep.subr.bf16.mxu0 %v2359_v6  ;;  %1339 = vmatprep.subr.bf16.mxu1 %v2365_v0  ;;  %v1751_v6 = vld [vmem:[%s2564_s2 + $0x8] ss:$16 sps:$4 sm:$0xff]  }
 0x60f   :  { %1328 = vmatprep.mubr.bf16.mxu0 %v2590_v49  ;;  %1369 = vmatprep.mubr.bf16.mxu1 %v2590_v49  ;;  %v1744_v49 = vld [vmem:[%s2564_s2 + $0x24] ss:$16 sps:$4 sm:$0xff]  }
 0x611   :  { %1299 = vmatpush1.bf16.msra.mxu0 %v2373_v58  ;;  %1340 = vmatpush1.bf16.msra.mxu1 %v2379_v56  ;;  %v2604_v56 = vld [vmem:[#allocation19_spill] sm:$0xff] }
 0x612   :  { %1300 = vmatprep.subr.bf16.mxu0 %v2385_v62  ;;  %1341 = vmatprep.subr.bf16.mxu1 %v2391_v47 }
 0x615   :  { %1301 = vmatpush1.bf16.msra.mxu0 %v2397_v29  ;;  %1342 = vmatpush1.bf16.msra.mxu1 %v2403_v46 }
 0x616   :  { %1302 = vmatprep.subr.bf16.mxu0 %v2409_v50  ;;  %1343 = vmatprep.subr.bf16.mxu1 %v2415_v5  ;;  %v2605_v50 = vld [vmem:[#allocation21_spill] sm:$0xff] }
 0x619   :  { %1303 = vmatpush1.bf16.msra.mxu0 %v2421_v60  ;;  %1344 = vmatpush1.bf16.msra.mxu1 %v2427_v9 }
 0x61a   :  { %1304 = vmatprep.subr.bf16.mxu0 %v2433_v55  ;;  %1345 = vmatprep.subr.bf16.mxu1 %v2439_v48 }
 0x61d   :  { %1305 = vmatpush1.bf16.msra.mxu0 %v2445_v14  ;;  %1346 = vmatpush1.bf16.msra.mxu1 %v2451_v15  ;;  %v2606_v15 = vld [vmem:[#allocation22_spill] sm:$0xff] }
 0x61e   :  { %1306 = vmatprep.subr.bf16.mxu0 %v2457_v16  ;;  %1347 = vmatprep.subr.bf16.mxu1 %v2463_v17  ;;  %v2607_v17 = vld [vmem:[#allocation20_spill] sm:$0xff] }
 0x621   :  { %1307 = vmatpush1.bf16.msra.mxu0 %v2469_v18  ;;  %1348 = vmatpush1.bf16.msra.mxu1 %v2475_v20 }
 0x622   :  { %1308 = vmatprep.subr.bf16.mxu0 %v1744_v49  ;;  %1349 = vmatprep.subr.bf16.mxu1 %v1745_v51 }
 0x625   :  { %1309 = vmatpush1.bf16.msra.mxu0 %v1746_v8  ;;  %1350 = vmatpush1.bf16.msra.mxu1 %v1747_v11 }
 0x626   :  { %1310 = vmatprep.subr.bf16.mxu0 %v1748_v52  ;;  %1351 = vmatprep.subr.bf16.mxu1 %v1749_v38 }
 0x629   :  { %1311 = vmatpush1.bf16.msra.mxu0 %v1750_v2  ;;  %1352 = vmatpush1.bf16.msra.mxu1 %v1751_v6 }
 0x6cc   :  { %v1219_v0 = vpop.f32.mrf.mxu0  ;;  %v1260_v58 = vpop.f32.mrf.mxu1 }
 0x6cd   :  { %v1220_v62 = vadd.f32 %v1219_v0, %v2604_v56  ;;  %v1261_v18 = vadd.f32 %v1260_v58, %v2607_v17 }
 0x6ce   :  { %v1221_v47 = vpop.f32.mrf.mxu0  ;;  %v1262_v29 = vpop.f32.mrf.mxu1 }
 0x6cf   :  { %v1513_v46 = vmul.f32 -1.442695, %v1220_v62  ;;  %v1222_v5 = vadd.f32 %v1221_v47, %v2605_v50  ;;  %v1263_v16 = vadd.f32 %v1262_v29, %v2606_v15  ;;  %v1519_v29 = vld [vmem:[%s2567_s4] ss:$0 sm:$0xff] }
 0x6d0   :  { %v1223_v60 = vpop.f32.mrf.mxu0  ;;  %v1264_v9 = vpop.f32.mrf.mxu1 }
 0x6d1   :  { %1684 = vpow2.f32 %v1513_v46  ;;  %v1514_v55 = vmul.f32 -1.442695, %v1222_v5  ;;  %v1515_v20 = vmul.f32 -1.442695, %v1263_v16  ;;  %v1520_v5 = vld [vmem:[#allocation5] ss:$0 sm:$0xff] }
 0x6d2   :  { %v1224_v48 = vpop.f32.mrf.mxu0  ;;  %v1265_v14 = vpop.f32.mrf.mxu1 }
 0x6d3   :  { %1686 = vpow2.f32 %v1514_v55 }
 0x6d4   :  { %1688 = vtanh.f32 %v1261_v18 }
 0x6d5   :  { %1690 = vpow2.f32 %v1515_v20 }
 0x6de   :  { %v1685_v21 = vpop.eup %1684 }
 0x6df   :  { %v1270_v36 = vadd.f32 1.0, %v1685_v21 }
 0x6e0   :  { %v1687_v22 = vpop.eup %1686 }
 0x6e1   :  { %1692 = vrcp.f32 %v1270_v36  ;;  %v1276_v37 = vadd.f32 1.0, %v1687_v22  ;;  %v1689_v23 = vpop.eup %1688 }
 0x6e2   :  { %v1691_v39 = vpop.eup %1690 }
 0x6e3   :  { %1694 = vrcp.f32 %v1276_v37  ;;  %v1283_v41 = vadd.f32 1.0, %v1691_v39 }
 0x6e5   :  { %1696 = vrcp.f32 %v1283_v41 }
 0x6ee   :  { %v1693_v24 = vpop.eup %1692 }
 0x6ef   :  { %v1287_v40 = vmul.f32 %v1693_v24, %v1689_v23 }
 0x6f0   :  { %v1695_v25 = vpop.eup %1694 }
 0x6f1   :  { %v1286_v26 = vmul.f32 %v1695_v25, %v2493_v1 }
 0x6f2   :  { %v1697_v43 = vpop.eup %1696 }
 0x6f3   :  { %v1288_v42 = vadd.f32 %v1287_v40, %v1286_v26 }
 0x6f5   :  { %1698 = vtanh.f32 %v1288_v42 }
 0x702   :  { %v1699_v27 = vpop.eup %1698 }
 0x703   :  { %v1290_v44 = vmul.f32 %v1699_v27, %v1697_v43 }
 0x705   :  { %v1291_v12 = vpack.c.bf16 %v1290_v44, %v1290_v44 }
 0x707   :  { %1329 = vmatmul.mubr.bf16.vlgmr.msra.gmra.mxu0 %v1291_v12  ;;  %1370 = vmatmul.mubr.bf16.vlgmr.msra.gmra.mxu1 %v1291_v12 }
 0x7c7   :  { %v1330_v13 = vpop.f32.mrf.mxu0  ;;  %v1371_v30 = vpop.f32.mrf.mxu1 }
 0x7c8   :  { %v1331_v32 = vadd.f32 %v1330_v13, %v2608_v31  ;;  %v1372_v53 = vadd.f32 %v1371_v30, %v2609_v4 }
 0x7c9   :  { %v1332_v33 = vpop.f32.mrf.mxu0  ;;  %v1373_v34 = vpop.f32.mrf.mxu1 }
 0x7ca   :  { %v1516_v35 = vmul.f32 -1.442695, %v1331_v32  ;;  %v1333_v45 = vadd.f32 %v1332_v33, %v2153_v7  ;;  %v1374_v1 = vadd.f32 %v1373_v34, %v2156_v19 }
 0x7cb   :  { %v1334_v3 = vpop.f32.mrf.mxu0  ;;  %v1375_v61 = vpop.f32.mrf.mxu1 }
 0x7cc   :  { %1700 = vpow2.f32 %v1516_v35  ;;  %v1517_v57 = vmul.f32 -1.442695, %v1333_v45  ;;  %v1518_v54 = vmul.f32 -1.442695, %v1374_v1 }
 0x7cd   :  { %v1335_v59 = vpop.f32.mrf.mxu0  ;;  %v1376_v63 = vpop.f32.mrf.mxu1 }
 0x7ce   :  { %1702 = vpow2.f32 %v1517_v57 }
 0x7cf   :  { %1704 = vtanh.f32 %v1372_v53 }
 0x7d0   :  { %1706 = vpow2.f32 %v1518_v54 }
 0x7d9   :  { %v1701_v10 = vpop.eup %1700 }
 0x7da   :  { %v1381_v49 = vadd.f32 1.0, %v1701_v10 }
 0x7db   :  { %v1703_v51 = vpop.eup %1702 }
 0x7dc   :  { %1708 = vrcp.f32 %v1381_v49  ;;  %v1387_v8 = vadd.f32 1.0, %v1703_v51  ;;  %v1705_v7 = vpop.eup %1704 }
 0x7dd   :  { %v1707_v11 = vpop.eup %1706 }
 0x7de   :  { %1710 = vrcp.f32 %v1387_v8  ;;  %v1394_v6 = vadd.f32 1.0, %v1707_v11 }
 0x7e0   :  { %1712 = vrcp.f32 %v1394_v6 }
 0x7e9   :  { %v1709_v52 = vpop.eup %1708 }
 0x7ea   :  { %v1398_v38 = vmul.f32 %v1709_v52, %v1705_v7 }
 0x7eb   :  { %v1711_v2 = vpop.eup %1710 }
 0x7ec   :  { %v1397_v0 = vmul.f32 %v1711_v2, %v1288_v42 }
 0x7ed   :  { %v1713_v19 = vpop.eup %1712 }
 0x7ee   :  { %v1399_v58 = vadd.f32 %v1398_v38, %v1397_v0 }
 0x7f0   :  { %1714 = vtanh.f32 %v1399_v58 }
 0x7fd   :  { %v1715_v56 = vpop.eup %1714 }
 0x7fe   :  { %v1401_v62 = vmul.f32 %v1715_v56, %v1713_v19 }
 0x800   :  { %v1402_v47 = vpack.c.bf16 %v1401_v62, %v1401_v62 }
 0x802   :  { %v1408_v46 = vunpack.c.l.bf16 %v1402_v47  ;;  %1403 = vst [vmem:[#allocation2] sm:$0xf] %v1402_v47 }
 0x804   :  { %v1416_v50 = vmul.f32 %v1519_v29, %v1408_v46 }
 0x806   :  { %1417 = vadd.xlane.f32.xlu0 %v1416_v50 }
 0x88f   :  { %v1418_v60 = vpop.xlane.xlu0 %1417 }
 0x890   :  { %v1426_v9 = vadd.f32 %v1520_v5, %v1418_v60 }
 0x892   :  { %v1521_v55 = vmul.f32 -1.442695, %v1426_v9 }
 0x894   :  { %1716 = vpow2.f32 %v1521_v55 }
 0x8a1   :  { %v1717_v48 = vpop.eup %1716 }
 0x8a2   :  { %v1430_v14 = vadd.f32 1.0, %v1717_v48 }
 0x8a4   :  { %1718 = vrcp.f32 %v1430_v14 }
 0x8b1   :  { %v1719_v15 = vpop.eup %1718 }
 0x8b2   :  { %1435 = vperm.xlu0 %1523, %v1719_v15  }
 0x92d   :  { %v1436_v16 = vpop.permute.xlu0 %1435 }
 0x92e   :  { %1438 = vst [vmem:[%s2568_s6] sm:$0xff] %v1436_v16 }

</bundles_post_ra>
